<compile_context>
chip_gen: v6e
topology: v6e:2x2x1
jax: 0.10.0
libtpu: 0.0.40
codegen_flags: <defaults>
</compile_context>

<pallas_src>
import math

import jax
import jax.numpy as jnp
from jax.experimental import pallas as pl
from jax.experimental.pallas import tpu as pltpu


def _round_up(n, m):
    return ((n + m - 1) // m) * m


def _make_fused_tcn_kernel(B, T, K, layer_meta):
    """Builds one kernel for the whole residual stack.

    Ref order: t_idx, x, [w1, b1, w2, b2, (w3, b3)] per layer, out.
      t_idx : (B*T, 1) int32  -- time index within each batch element
      x     : (B*T, C0) f32   -- batch folded into the sublane dim
      w1    : (K, Cin, Cmid)  w2 : (K, Cmid, Cout)  w3 : (Cin, Cout)
      b*    : (1, C)
    """
    BT = B * T

    def kernel(*refs):
        t_ref, x_ref = refs[0], refs[1]
        o_ref = refs[-1]
        prefs = refs[2:-1]

        t_idx = t_ref[...]                         # (BT, 1) int32
        h = x_ref[...]                             # (BT, C0) f32

        def causal_conv(v, w_ref, b, d, masks):
            # v: (BT, C) activations; w_ref: (K, C, Cout); b: (1, Cout).
            C = v.shape[1]
            P = _round_up((K - 1) * d, 8)          # sublane-aligned zero pad
            vp = jnp.concatenate(
                [jnp.zeros((P, C), jnp.float32), v], axis=0)   # (P+BT, C)
            # Tap k reads v[t - (K-1-k)*d]; k == K-1 is the unshifted tap.
            acc = jnp.dot(v, w_ref[K - 1],
                          preferred_element_type=jnp.float32) + b
            for k in range(K - 1):
                s = (K - 1 - k) * d
                tap = vp[P - s:P - s + BT, :]      # tap[r] = v[r - s]
                tap = jnp.where(masks[s], tap, 0.0)  # causal zeros per batch
                acc = acc + jnp.dot(tap, w_ref[k],
                                    preferred_element_type=jnp.float32)
            return acc

        pi = 0
        for m in layer_meta:
            d = m["dilation"]
            w1_ref, b1_ref = prefs[pi], prefs[pi + 1]
            w2_ref, b2_ref = prefs[pi + 2], prefs[pi + 3]
            pi += 4
            if m["has_conv3"]:
                w3_ref, b3_ref = prefs[pi], prefs[pi + 1]
                pi += 2

            # Causal masks for this layer's shifts, shared by conv1 and conv2.
            shifts = {(K - 1 - k) * d for k in range(K - 1)}
            masks = {s: t_idx >= s for s in shifts}

            # conv1 (causal, dilated) + ReLU; dropout = identity (eval mode)
            a1 = causal_conv(h, w1_ref, b1_ref[...], d, masks)
            a1 = jnp.maximum(a1, 0.0)

            # conv2 (causal, dilated); ReLU on all but the last block
            a2 = causal_conv(a1, w2_ref, b2_ref[...], d, masks)
            if m["relu2"]:
                a2 = jnp.maximum(a2, 0.0)

            # residual path (1x1 conv when channel counts differ)
            if m["has_conv3"]:
                res = jnp.dot(h, w3_ref[...],
                              preferred_element_type=jnp.float32) + b3_ref[...]
            else:
                res = h
            h = a2 + res

        o_ref[...] = h

    return kernel


# ---------------------------------------------------------------------------
# Model (parameter construction + forward glue in plain JAX)
# ---------------------------------------------------------------------------
class TCNModelPallas:
    def __init__(self, seq_len, pred_len, enc_in, key):
        self.seq_len = seq_len
        self.pred_len = pred_len
        self.target_size = enc_in

        kernel_size = 3
        num_filters = 3
        dilation_base = 2
        nr_params = 1
        self.kernel_size = kernel_size

        # num_layers chosen exactly as in the PyTorch module (dilation_base > 1)
        num_layers = math.ceil(
            math.log((seq_len - 1) * (dilation_base - 1) /
                     (kernel_size - 1) / 2 + 1, dilation_base))
        self.num_layers = num_layers

        def uni(k, shape, fan_in):
            # PyTorch Conv1d default init: U(-1/sqrt(fan_in), 1/sqrt(fan_in))
            bound = 1.0 / math.sqrt(fan_in)
            return jax.random.uniform(k, shape, jnp.float32, -bound, bound)

        self.blocks = []
        for i in range(num_layers):
            input_dim = enc_in if i == 0 else num_filters
            output_dim = enc_in * nr_params if i == num_layers - 1 else num_filters
            dilation = dilation_base ** i
            key, k1, k2, k3, k4, k5, k6 = jax.random.split(key, 7)

            w1 = uni(k1, (num_filters, input_dim, kernel_size),
                     input_dim * kernel_size)          # torch layout (Cout,Cin,K)
            b1 = uni(k2, (num_filters,), input_dim * kernel_size)
            w2 = uni(k3, (output_dim, num_filters, kernel_size),
                     num_filters * kernel_size)
            b2 = uni(k4, (output_dim,), num_filters * kernel_size)

            params = {
                "w1": jnp.transpose(w1, (2, 1, 0)),    # (K, Cin, Cmid)
                "b1": b1.reshape(1, num_filters),
                "w2": jnp.transpose(w2, (2, 1, 0)),    # (K, Cmid, Cout)
                "b2": b2.reshape(1, output_dim),
            }
            torch_w = {"w1": w1, "b1": b1, "w2": w2, "b2": b2}

            has_conv3 = (input_dim != output_dim)
            if has_conv3:
                w3 = uni(k5, (output_dim, input_dim, 1), input_dim)
                b3 = uni(k6, (output_dim,), input_dim)
                params["w3"] = jnp.transpose(w3[:, :, 0], (1, 0))  # (Cin, Cout)
                params["b3"] = b3.reshape(1, output_dim)
                torch_w["w3"] = w3
                torch_w["b3"] = b3

            self.blocks.append({
                "params": params,
                "meta": {"Cin": input_dim, "Cmid": num_filters,
                         "Cout": output_dim, "dilation": dilation,
                         "relu2": i < num_layers - 1,
                         "has_conv3": has_conv3},
                "torch": torch_w,
            })

    def forward(self, batch_x, batch_x_mark=None, dec_inp=None,
                batch_y_mark=None):
        # batch_x: (B, seq_len, enc_in).  PyTorch transposes to NCL for Conv1d;
        # the fused kernel consumes time-in-sublanes / channels-in-lanes, so the
        # transpose pair cancels.  Whole batch + all layers in one pallas_call.
        x = batch_x.astype(jnp.float32)
        B, T, C0 = x.shape
        BT = B * T
        Cend = self.blocks[-1]["meta"]["Cout"]

        x2 = x.reshape(BT, C0)                       # fold batch into sublanes
        t_idx = jnp.tile(jnp.arange(T, dtype=jnp.int32), B).reshape(BT, 1)

        inputs = [t_idx, x2]
        layer_meta = []
        for blk in self.blocks:
            p, m = blk["params"], blk["meta"]
            inputs += [p["w1"], p["b1"], p["w2"], p["b2"]]
            if m["has_conv3"]:
                inputs += [p["w3"], p["b3"]]
            layer_meta.append(m)

        vmem = pl.BlockSpec(memory_space=pltpu.MemorySpace.VMEM)
        kernel = _make_fused_tcn_kernel(B, T, self.kernel_size, layer_meta)
        out = pl.pallas_call(
            kernel,
            out_shape=jax.ShapeDtypeStruct((BT, Cend), jnp.float32),
            in_specs=[vmem] * len(inputs),
            out_specs=vmem,
        )(*inputs)
        return out.reshape(B, self.seq_len, self.target_size)

    # -------- pure-JAX reference (for correctness check) --------
    def reference_forward(self, batch_x):
        x = batch_x.astype(jnp.float32)
        for blk in self.blocks:
            x = _ref_res_block(x, blk)
        return x


def _ref_causal_conv1d(x, w, b, dilation):
    # x: (B, T, Cin); w: (Cout, Cin, K) torch layout; b: (Cout,)
    B, T, _ = x.shape
    Cout, _, K = w.shape
    L = dilation * (K - 1)
    xp = jnp.pad(x, ((0, 0), (L, 0), (0, 0)))
    out = jnp.broadcast_to(b[None, None, :], (B, T, Cout)).astype(jnp.float32)
    for k in range(K):
        out = out + jnp.einsum("btc,oc->bto",
                               xp[:, k * dilation:k * dilation + T, :],
                               w[:, :, k],
                               precision=jax.lax.Precision.HIGHEST)
    return out


def _ref_res_block(x, blk):
    tw = blk["torch"]
    m = blk["meta"]
    d = m["dilation"]
    residual = x
    h = jax.nn.relu(_ref_causal_conv1d(x, tw["w1"], tw["b1"], d))
    y = _ref_causal_conv1d(h, tw["w2"], tw["b2"], d)
    if m["relu2"]:
        y = jax.nn.relu(y)
    if m["has_conv3"]:
        residual = (jnp.einsum("btc,oc->bto", x, tw["w3"][:, :, 0],
                               precision=jax.lax.Precision.HIGHEST)
                    + tw["b3"][None, None, :])
    return y + residual


if __name__ == "__main__":
    key = jax.random.PRNGKey(0)
    key, pkey, xkey = jax.random.split(key, 3)

    B, seq_len, pred_len, enc_in = 2, 16, 8, 4
    model = TCNModelPallas(seq_len, pred_len, enc_in, pkey)

    batch_x = jax.random.normal(xkey, (B, seq_len, enc_in), jnp.float32)
    batch_x_mark = jnp.zeros((B, seq_len, 4), jnp.float32)   # unused by forward
    dec_inp = jnp.zeros((B, pred_len, enc_in), jnp.float32)  # unused by forward
    batch_y_mark = jnp.zeros((B, pred_len, 4), jnp.float32)  # unused by forward

    out = model.forward(batch_x, batch_x_mark, dec_inp, batch_y_mark)
    out = jax.block_until_ready(out)

    ref = model.reference_forward(batch_x)
    assert out.shape == (B, seq_len, enc_in), out.shape
    assert jnp.allclose(out, ref, atol=1e-4, rtol=1e-4), "mismatch vs reference"
    print("KERNEL_OK")
</pallas_src>

<mosaic_0001>
module attributes {stable_mosaic.version = 11 : i64} {
  func.func @kernel(%arg0: memref<32x1xi32, #tpu.memory_space<vmem>>, %arg1: memref<32x4xf32, #tpu.memory_space<vmem>>, %arg2: memref<3x4x3xf32, #tpu.memory_space<vmem>>, %arg3: memref<1x3xf32, #tpu.memory_space<vmem>>, %arg4: memref<3x3x3xf32, #tpu.memory_space<vmem>>, %arg5: memref<1x3xf32, #tpu.memory_space<vmem>>, %arg6: memref<4x3xf32, #tpu.memory_space<vmem>>, %arg7: memref<1x3xf32, #tpu.memory_space<vmem>>, %arg8: memref<3x3x3xf32, #tpu.memory_space<vmem>>, %arg9: memref<1x3xf32, #tpu.memory_space<vmem>>, %arg10: memref<3x3x3xf32, #tpu.memory_space<vmem>>, %arg11: memref<1x3xf32, #tpu.memory_space<vmem>>, %arg12: memref<3x3x3xf32, #tpu.memory_space<vmem>>, %arg13: memref<1x3xf32, #tpu.memory_space<vmem>>, %arg14: memref<3x3x4xf32, #tpu.memory_space<vmem>>, %arg15: memref<1x4xf32, #tpu.memory_space<vmem>>, %arg16: memref<3x4xf32, #tpu.memory_space<vmem>>, %arg17: memref<1x4xf32, #tpu.memory_space<vmem>>, %arg18: memref<32x4xf32, #tpu.memory_space<vmem>>) attributes {dimension_semantics = [], scalar_prefetch = 0 : i64, scratch_operands = 0 : i64, tpu.core_type = #tpu.core_type<tc>} {
    %c0 = arith.constant 0 : index
    %c0_0 = arith.constant 0 : index
    %0 = vector.load %arg0[%c0, %c0_0] : memref<32x1xi32, #tpu.memory_space<vmem>>, vector<32x1xi32>
    %c0_1 = arith.constant 0 : index
    %c0_2 = arith.constant 0 : index
    %1 = vector.load %arg1[%c0_1, %c0_2] : memref<32x4xf32, #tpu.memory_space<vmem>>, vector<32x4xf32>
    %c1_i32 = arith.constant 1 : i32
    %2 = vector.broadcast %c1_i32 : i32 to vector<32x1xi32>
    %3 = arith.cmpi sge, %0, %2 : vector<32x1xi32>
    %c2_i32 = arith.constant 2 : i32
    %4 = vector.broadcast %c2_i32 : i32 to vector<32x1xi32>
    %5 = arith.cmpi sge, %0, %4 : vector<32x1xi32>
    %c0_3 = arith.constant 0 : index
    %c0_4 = arith.constant 0 : index
    %6 = vector.load %arg3[%c0_3, %c0_4] : memref<1x3xf32, #tpu.memory_space<vmem>>, vector<1x3xf32>
    %cst = arith.constant 0.000000e+00 : f32
    %7 = vector.broadcast %cst : f32 to vector<8x4xf32>
    %8 = tpu.concatenate %7, %1 in 0 : vector<8x4xf32>, vector<32x4xf32> -> vector<40x4xf32>
    %c2 = arith.constant 2 : index
    %c0_5 = arith.constant 0 : index
    %c0_6 = arith.constant 0 : index
    %9 = vector.load %arg2[%c2, %c0_5, %c0_6] : memref<3x4x3xf32, #tpu.memory_space<vmem>>, vector<1x4x3xf32>
    %10 = vector.shape_cast %9 : vector<1x4x3xf32> to vector<4x3xf32>
    %cst_7 = arith.constant dense<0.000000e+00> : vector<32x3xf32>
    %11 = tpu.matmul %1, %10, %cst_7 {dimension_numbers = #tpu.dot_dimension_numbers<[1], [0], [0], [1], [0, 0, 1, 1], [], []>} : vector<32x4xf32>, vector<4x3xf32>, vector<32x3xf32> -> vector<32x3xf32>
    %12 = vector.broadcast %6 : vector<1x3xf32> to vector<32x3xf32>
    %13 = arith.addf %11, %12 : vector<32x3xf32>
    %14 = vector.extract_strided_slice %8 {offsets = [6, 0], sizes = [32, 4], strides = [1, 1]} : vector<40x4xf32> to vector<32x4xf32>
    %cst_8 = arith.constant 0.000000e+00 : f32
    %15 = vector.shape_cast %5 : vector<32x1xi1> to vector<32x1xi1>
    %16 = vector.broadcast %15 : vector<32x1xi1> to vector<32x4xi1>
    %17 = vector.broadcast %cst_8 : f32 to vector<32x4xf32>
    %18 = arith.select %16, %14, %17 : vector<32x4xi1>, vector<32x4xf32>
    %c0_9 = arith.constant 0 : index
    %c0_10 = arith.constant 0 : index
    %c0_11 = arith.constant 0 : index
    %19 = vector.load %arg2[%c0_9, %c0_10, %c0_11] : memref<3x4x3xf32, #tpu.memory_space<vmem>>, vector<1x4x3xf32>
    %20 = vector.shape_cast %19 : vector<1x4x3xf32> to vector<4x3xf32>
    %cst_12 = arith.constant dense<0.000000e+00> : vector<32x3xf32>
    %21 = tpu.matmul %18, %20, %cst_12 {dimension_numbers = #tpu.dot_dimension_numbers<[1], [0], [0], [1], [0, 0, 1, 1], [], []>} : vector<32x4xf32>, vector<4x3xf32>, vector<32x3xf32> -> vector<32x3xf32>
    %22 = arith.addf %13, %21 : vector<32x3xf32>
    %23 = vector.extract_strided_slice %8 {offsets = [7, 0], sizes = [32, 4], strides = [1, 1]} : vector<40x4xf32> to vector<32x4xf32>
    %cst_13 = arith.constant 0.000000e+00 : f32
    %24 = vector.shape_cast %3 : vector<32x1xi1> to vector<32x1xi1>
    %25 = vector.broadcast %24 : vector<32x1xi1> to vector<32x4xi1>
    %26 = vector.broadcast %cst_13 : f32 to vector<32x4xf32>
    %27 = arith.select %25, %23, %26 : vector<32x4xi1>, vector<32x4xf32>
    %c1 = arith.constant 1 : index
    %c0_14 = arith.constant 0 : index
    %c0_15 = arith.constant 0 : index
    %28 = vector.load %arg2[%c1, %c0_14, %c0_15] : memref<3x4x3xf32, #tpu.memory_space<vmem>>, vector<1x4x3xf32>
    %29 = vector.shape_cast %28 : vector<1x4x3xf32> to vector<4x3xf32>
    %cst_16 = arith.constant dense<0.000000e+00> : vector<32x3xf32>
    %30 = tpu.matmul %27, %29, %cst_16 {dimension_numbers = #tpu.dot_dimension_numbers<[1], [0], [0], [1], [0, 0, 1, 1], [], []>} : vector<32x4xf32>, vector<4x3xf32>, vector<32x3xf32> -> vector<32x3xf32>
    %31 = arith.addf %22, %30 : vector<32x3xf32>
    %cst_17 = arith.constant 0.000000e+00 : f32
    %32 = vector.broadcast %cst_17 : f32 to vector<32x3xf32>
    %33 = arith.maximumf %31, %32 : vector<32x3xf32>
    %c0_18 = arith.constant 0 : index
    %c0_19 = arith.constant 0 : index
    %34 = vector.load %arg5[%c0_18, %c0_19] : memref<1x3xf32, #tpu.memory_space<vmem>>, vector<1x3xf32>
    %cst_20 = arith.constant 0.000000e+00 : f32
    %35 = vector.broadcast %cst_20 : f32 to vector<8x3xf32>
    %36 = tpu.concatenate %35, %33 in 0 : vector<8x3xf32>, vector<32x3xf32> -> vector<40x3xf32>
    %c2_21 = arith.constant 2 : index
    %c0_22 = arith.constant 0 : index
    %c0_23 = arith.constant 0 : index
    %37 = vector.load %arg4[%c2_21, %c0_22, %c0_23] : memref<3x3x3xf32, #tpu.memory_space<vmem>>, vector<1x3x3xf32>
    %38 = vector.shape_cast %37 : vector<1x3x3xf32> to vector<3x3xf32>
    %cst_24 = arith.constant dense<0.000000e+00> : vector<32x3xf32>
    %39 = tpu.matmul %33, %38, %cst_24 {dimension_numbers = #tpu.dot_dimension_numbers<[1], [0], [0], [1], [0, 0, 1, 1], [], []>} : vector<32x3xf32>, vector<3x3xf32>, vector<32x3xf32> -> vector<32x3xf32>
    %40 = vector.broadcast %34 : vector<1x3xf32> to vector<32x3xf32>
    %41 = arith.addf %39, %40 : vector<32x3xf32>
    %42 = vector.extract_strided_slice %36 {offsets = [6, 0], sizes = [32, 3], strides = [1, 1]} : vector<40x3xf32> to vector<32x3xf32>
    %cst_25 = arith.constant 0.000000e+00 : f32
    %43 = vector.shape_cast %5 : vector<32x1xi1> to vector<32x1xi1>
    %44 = vector.broadcast %43 : vector<32x1xi1> to vector<32x3xi1>
    %45 = vector.broadcast %cst_25 : f32 to vector<32x3xf32>
    %46 = arith.select %44, %42, %45 : vector<32x3xi1>, vector<32x3xf32>
    %c0_26 = arith.constant 0 : index
    %c0_27 = arith.constant 0 : index
    %c0_28 = arith.constant 0 : index
    %47 = vector.load %arg4[%c0_26, %c0_27, %c0_28] : memref<3x3x3xf32, #tpu.memory_space<vmem>>, vector<1x3x3xf32>
    %48 = vector.shape_cast %47 : vector<1x3x3xf32> to vector<3x3xf32>
    %cst_29 = arith.constant dense<0.000000e+00> : vector<32x3xf32>
    %49 = tpu.matmul %46, %48, %cst_29 {dimension_numbers = #tpu.dot_dimension_numbers<[1], [0], [0], [1], [0, 0, 1, 1], [], []>} : vector<32x3xf32>, vector<3x3xf32>, vector<32x3xf32> -> vector<32x3xf32>
    %50 = arith.addf %41, %49 : vector<32x3xf32>
    %51 = vector.extract_strided_slice %36 {offsets = [7, 0], sizes = [32, 3], strides = [1, 1]} : vector<40x3xf32> to vector<32x3xf32>
    %cst_30 = arith.constant 0.000000e+00 : f32
    %52 = vector.shape_cast %3 : vector<32x1xi1> to vector<32x1xi1>
    %53 = vector.broadcast %52 : vector<32x1xi1> to vector<32x3xi1>
    %54 = vector.broadcast %cst_30 : f32 to vector<32x3xf32>
    %55 = arith.select %53, %51, %54 : vector<32x3xi1>, vector<32x3xf32>
    %c1_31 = arith.constant 1 : index
    %c0_32 = arith.constant 0 : index
    %c0_33 = arith.constant 0 : index
    %56 = vector.load %arg4[%c1_31, %c0_32, %c0_33] : memref<3x3x3xf32, #tpu.memory_space<vmem>>, vector<1x3x3xf32>
    %57 = vector.shape_cast %56 : vector<1x3x3xf32> to vector<3x3xf32>
    %cst_34 = arith.constant dense<0.000000e+00> : vector<32x3xf32>
    %58 = tpu.matmul %55, %57, %cst_34 {dimension_numbers = #tpu.dot_dimension_numbers<[1], [0], [0], [1], [0, 0, 1, 1], [], []>} : vector<32x3xf32>, vector<3x3xf32>, vector<32x3xf32> -> vector<32x3xf32>
    %59 = arith.addf %50, %58 : vector<32x3xf32>
    %cst_35 = arith.constant 0.000000e+00 : f32
    %60 = vector.broadcast %cst_35 : f32 to vector<32x3xf32>
    %61 = arith.maximumf %59, %60 : vector<32x3xf32>
    %c0_36 = arith.constant 0 : index
    %c0_37 = arith.constant 0 : index
    %62 = vector.load %arg6[%c0_36, %c0_37] : memref<4x3xf32, #tpu.memory_space<vmem>>, vector<4x3xf32>
    %cst_38 = arith.constant dense<0.000000e+00> : vector<32x3xf32>
    %63 = tpu.matmul %1, %62, %cst_38 {dimension_numbers = #tpu.dot_dimension_numbers<[1], [0], [0], [1], [0, 0, 1, 1], [], []>} : vector<32x4xf32>, vector<4x3xf32>, vector<32x3xf32> -> vector<32x3xf32>
    %c0_39 = arith.constant 0 : index
    %c0_40 = arith.constant 0 : index
    %64 = vector.load %arg7[%c0_39, %c0_40] : memref<1x3xf32, #tpu.memory_space<vmem>>, vector<1x3xf32>
    %65 = vector.broadcast %64 : vector<1x3xf32> to vector<32x3xf32>
    %66 = arith.addf %63, %65 : vector<32x3xf32>
    %67 = arith.addf %61, %66 : vector<32x3xf32>
    %c2_i32_41 = arith.constant 2 : i32
    %68 = vector.broadcast %c2_i32_41 : i32 to vector<32x1xi32>
    %69 = arith.cmpi sge, %0, %68 : vector<32x1xi32>
    %c4_i32 = arith.constant 4 : i32
    %70 = vector.broadcast %c4_i32 : i32 to vector<32x1xi32>
    %71 = arith.cmpi sge, %0, %70 : vector<32x1xi32>
    %c0_42 = arith.constant 0 : index
    %c0_43 = arith.constant 0 : index
    %72 = vector.load %arg9[%c0_42, %c0_43] : memref<1x3xf32, #tpu.memory_space<vmem>>, vector<1x3xf32>
    %cst_44 = arith.constant 0.000000e+00 : f32
    %73 = vector.broadcast %cst_44 : f32 to vector<8x3xf32>
    %74 = tpu.concatenate %73, %67 in 0 : vector<8x3xf32>, vector<32x3xf32> -> vector<40x3xf32>
    %c2_45 = arith.constant 2 : index
    %c0_46 = arith.constant 0 : index
    %c0_47 = arith.constant 0 : index
    %75 = vector.load %arg8[%c2_45, %c0_46, %c0_47] : memref<3x3x3xf32, #tpu.memory_space<vmem>>, vector<1x3x3xf32>
    %76 = vector.shape_cast %75 : vector<1x3x3xf32> to vector<3x3xf32>
    %cst_48 = arith.constant dense<0.000000e+00> : vector<32x3xf32>
    %77 = tpu.matmul %67, %76, %cst_48 {dimension_numbers = #tpu.dot_dimension_numbers<[1], [0], [0], [1], [0, 0, 1, 1], [], []>} : vector<32x3xf32>, vector<3x3xf32>, vector<32x3xf32> -> vector<32x3xf32>
    %78 = vector.broadcast %72 : vector<1x3xf32> to vector<32x3xf32>
    %79 = arith.addf %77, %78 : vector<32x3xf32>
    %80 = vector.extract_strided_slice %74 {offsets = [4, 0], sizes = [32, 3], strides = [1, 1]} : vector<40x3xf32> to vector<32x3xf32>
    %cst_49 = arith.constant 0.000000e+00 : f32
    %81 = vector.shape_cast %71 : vector<32x1xi1> to vector<32x1xi1>
    %82 = vector.broadcast %81 : vector<32x1xi1> to vector<32x3xi1>
    %83 = vector.broadcast %cst_49 : f32 to vector<32x3xf32>
    %84 = arith.select %82, %80, %83 : vector<32x3xi1>, vector<32x3xf32>
    %c0_50 = arith.constant 0 : index
    %c0_51 = arith.constant 0 : index
    %c0_52 = arith.constant 0 : index
    %85 = vector.load %arg8[%c0_50, %c0_51, %c0_52] : memref<3x3x3xf32, #tpu.memory_space<vmem>>, vector<1x3x3xf32>
    %86 = vector.shape_cast %85 : vector<1x3x3xf32> to vector<3x3xf32>
    %cst_53 = arith.constant dense<0.000000e+00> : vector<32x3xf32>
    %87 = tpu.matmul %84, %86, %cst_53 {dimension_numbers = #tpu.dot_dimension_numbers<[1], [0], [0], [1], [0, 0, 1, 1], [], []>} : vector<32x3xf32>, vector<3x3xf32>, vector<32x3xf32> -> vector<32x3xf32>
    %88 = arith.addf %79, %87 : vector<32x3xf32>
    %89 = vector.extract_strided_slice %74 {offsets = [6, 0], sizes = [32, 3], strides = [1, 1]} : vector<40x3xf32> to vector<32x3xf32>
    %cst_54 = arith.constant 0.000000e+00 : f32
    %90 = vector.shape_cast %69 : vector<32x1xi1> to vector<32x1xi1>
    %91 = vector.broadcast %90 : vector<32x1xi1> to vector<32x3xi1>
    %92 = vector.broadcast %cst_54 : f32 to vector<32x3xf32>
    %93 = arith.select %91, %89, %92 : vector<32x3xi1>, vector<32x3xf32>
    %c1_55 = arith.constant 1 : index
    %c0_56 = arith.constant 0 : index
    %c0_57 = arith.constant 0 : index
    %94 = vector.load %arg8[%c1_55, %c0_56, %c0_57] : memref<3x3x3xf32, #tpu.memory_space<vmem>>, vector<1x3x3xf32>
    %95 = vector.shape_cast %94 : vector<1x3x3xf32> to vector<3x3xf32>
    %cst_58 = arith.constant dense<0.000000e+00> : vector<32x3xf32>
    %96 = tpu.matmul %93, %95, %cst_58 {dimension_numbers = #tpu.dot_dimension_numbers<[1], [0], [0], [1], [0, 0, 1, 1], [], []>} : vector<32x3xf32>, vector<3x3xf32>, vector<32x3xf32> -> vector<32x3xf32>
    %97 = arith.addf %88, %96 : vector<32x3xf32>
    %cst_59 = arith.constant 0.000000e+00 : f32
    %98 = vector.broadcast %cst_59 : f32 to vector<32x3xf32>
    %99 = arith.maximumf %97, %98 : vector<32x3xf32>
    %c0_60 = arith.constant 0 : index
    %c0_61 = arith.constant 0 : index
    %100 = vector.load %arg11[%c0_60, %c0_61] : memref<1x3xf32, #tpu.memory_space<vmem>>, vector<1x3xf32>
    %cst_62 = arith.constant 0.000000e+00 : f32
    %101 = vector.broadcast %cst_62 : f32 to vector<8x3xf32>
    %102 = tpu.concatenate %101, %99 in 0 : vector<8x3xf32>, vector<32x3xf32> -> vector<40x3xf32>
    %c2_63 = arith.constant 2 : index
    %c0_64 = arith.constant 0 : index
    %c0_65 = arith.constant 0 : index
    %103 = vector.load %arg10[%c2_63, %c0_64, %c0_65] : memref<3x3x3xf32, #tpu.memory_space<vmem>>, vector<1x3x3xf32>
    %104 = vector.shape_cast %103 : vector<1x3x3xf32> to vector<3x3xf32>
    %cst_66 = arith.constant dense<0.000000e+00> : vector<32x3xf32>
    %105 = tpu.matmul %99, %104, %cst_66 {dimension_numbers = #tpu.dot_dimension_numbers<[1], [0], [0], [1], [0, 0, 1, 1], [], []>} : vector<32x3xf32>, vector<3x3xf32>, vector<32x3xf32> -> vector<32x3xf32>
    %106 = vector.broadcast %100 : vector<1x3xf32> to vector<32x3xf32>
    %107 = arith.addf %105, %106 : vector<32x3xf32>
    %108 = vector.extract_strided_slice %102 {offsets = [4, 0], sizes = [32, 3], strides = [1, 1]} : vector<40x3xf32> to vector<32x3xf32>
    %cst_67 = arith.constant 0.000000e+00 : f32
    %109 = vector.shape_cast %71 : vector<32x1xi1> to vector<32x1xi1>
    %110 = vector.broadcast %109 : vector<32x1xi1> to vector<32x3xi1>
    %111 = vector.broadcast %cst_67 : f32 to vector<32x3xf32>
    %112 = arith.select %110, %108, %111 : vector<32x3xi1>, vector<32x3xf32>
    %c0_68 = arith.constant 0 : index
    %c0_69 = arith.constant 0 : index
    %c0_70 = arith.constant 0 : index
    %113 = vector.load %arg10[%c0_68, %c0_69, %c0_70] : memref<3x3x3xf32, #tpu.memory_space<vmem>>, vector<1x3x3xf32>
    %114 = vector.shape_cast %113 : vector<1x3x3xf32> to vector<3x3xf32>
    %cst_71 = arith.constant dense<0.000000e+00> : vector<32x3xf32>
    %115 = tpu.matmul %112, %114, %cst_71 {dimension_numbers = #tpu.dot_dimension_numbers<[1], [0], [0], [1], [0, 0, 1, 1], [], []>} : vector<32x3xf32>, vector<3x3xf32>, vector<32x3xf32> -> vector<32x3xf32>
    %116 = arith.addf %107, %115 : vector<32x3xf32>
    %117 = vector.extract_strided_slice %102 {offsets = [6, 0], sizes = [32, 3], strides = [1, 1]} : vector<40x3xf32> to vector<32x3xf32>
    %cst_72 = arith.constant 0.000000e+00 : f32
    %118 = vector.shape_cast %69 : vector<32x1xi1> to vector<32x1xi1>
    %119 = vector.broadcast %118 : vector<32x1xi1> to vector<32x3xi1>
    %120 = vector.broadcast %cst_72 : f32 to vector<32x3xf32>
    %121 = arith.select %119, %117, %120 : vector<32x3xi1>, vector<32x3xf32>
    %c1_73 = arith.constant 1 : index
    %c0_74 = arith.constant 0 : index
    %c0_75 = arith.constant 0 : index
    %122 = vector.load %arg10[%c1_73, %c0_74, %c0_75] : memref<3x3x3xf32, #tpu.memory_space<vmem>>, vector<1x3x3xf32>
    %123 = vector.shape_cast %122 : vector<1x3x3xf32> to vector<3x3xf32>
    %cst_76 = arith.constant dense<0.000000e+00> : vector<32x3xf32>
    %124 = tpu.matmul %121, %123, %cst_76 {dimension_numbers = #tpu.dot_dimension_numbers<[1], [0], [0], [1], [0, 0, 1, 1], [], []>} : vector<32x3xf32>, vector<3x3xf32>, vector<32x3xf32> -> vector<32x3xf32>
    %125 = arith.addf %116, %124 : vector<32x3xf32>
    %cst_77 = arith.constant 0.000000e+00 : f32
    %126 = vector.broadcast %cst_77 : f32 to vector<32x3xf32>
    %127 = arith.maximumf %125, %126 : vector<32x3xf32>
    %128 = arith.addf %127, %67 : vector<32x3xf32>
    %c8_i32 = arith.constant 8 : i32
    %129 = vector.broadcast %c8_i32 : i32 to vector<32x1xi32>
    %130 = arith.cmpi sge, %0, %129 : vector<32x1xi32>
    %c4_i32_78 = arith.constant 4 : i32
    %131 = vector.broadcast %c4_i32_78 : i32 to vector<32x1xi32>
    %132 = arith.cmpi sge, %0, %131 : vector<32x1xi32>
    %c0_79 = arith.constant 0 : index
    %c0_80 = arith.constant 0 : index
    %133 = vector.load %arg13[%c0_79, %c0_80] : memref<1x3xf32, #tpu.memory_space<vmem>>, vector<1x3xf32>
    %cst_81 = arith.constant 0.000000e+00 : f32
    %134 = vector.broadcast %cst_81 : f32 to vector<8x3xf32>
    %135 = tpu.concatenate %134, %128 in 0 : vector<8x3xf32>, vector<32x3xf32> -> vector<40x3xf32>
    %c2_82 = arith.constant 2 : index
    %c0_83 = arith.constant 0 : index
    %c0_84 = arith.constant 0 : index
    %136 = vector.load %arg12[%c2_82, %c0_83, %c0_84] : memref<3x3x3xf32, #tpu.memory_space<vmem>>, vector<1x3x3xf32>
    %137 = vector.shape_cast %136 : vector<1x3x3xf32> to vector<3x3xf32>
    %cst_85 = arith.constant dense<0.000000e+00> : vector<32x3xf32>
    %138 = tpu.matmul %128, %137, %cst_85 {dimension_numbers = #tpu.dot_dimension_numbers<[1], [0], [0], [1], [0, 0, 1, 1], [], []>} : vector<32x3xf32>, vector<3x3xf32>, vector<32x3xf32> -> vector<32x3xf32>
    %139 = vector.broadcast %133 : vector<1x3xf32> to vector<32x3xf32>
    %140 = arith.addf %138, %139 : vector<32x3xf32>
    %141 = vector.extract_strided_slice %135 {offsets = [0, 0], sizes = [32, 3], strides = [1, 1]} : vector<40x3xf32> to vector<32x3xf32>
    %cst_86 = arith.constant 0.000000e+00 : f32
    %142 = vector.shape_cast %130 : vector<32x1xi1> to vector<32x1xi1>
    %143 = vector.broadcast %142 : vector<32x1xi1> to vector<32x3xi1>
    %144 = vector.broadcast %cst_86 : f32 to vector<32x3xf32>
    %145 = arith.select %143, %141, %144 : vector<32x3xi1>, vector<32x3xf32>
    %c0_87 = arith.constant 0 : index
    %c0_88 = arith.constant 0 : index
    %c0_89 = arith.constant 0 : index
    %146 = vector.load %arg12[%c0_87, %c0_88, %c0_89] : memref<3x3x3xf32, #tpu.memory_space<vmem>>, vector<1x3x3xf32>
    %147 = vector.shape_cast %146 : vector<1x3x3xf32> to vector<3x3xf32>
    %cst_90 = arith.constant dense<0.000000e+00> : vector<32x3xf32>
    %148 = tpu.matmul %145, %147, %cst_90 {dimension_numbers = #tpu.dot_dimension_numbers<[1], [0], [0], [1], [0, 0, 1, 1], [], []>} : vector<32x3xf32>, vector<3x3xf32>, vector<32x3xf32> -> vector<32x3xf32>
    %149 = arith.addf %140, %148 : vector<32x3xf32>
    %150 = vector.extract_strided_slice %135 {offsets = [4, 0], sizes = [32, 3], strides = [1, 1]} : vector<40x3xf32> to vector<32x3xf32>
    %cst_91 = arith.constant 0.000000e+00 : f32
    %151 = vector.shape_cast %132 : vector<32x1xi1> to vector<32x1xi1>
    %152 = vector.broadcast %151 : vector<32x1xi1> to vector<32x3xi1>
    %153 = vector.broadcast %cst_91 : f32 to vector<32x3xf32>
    %154 = arith.select %152, %150, %153 : vector<32x3xi1>, vector<32x3xf32>
    %c1_92 = arith.constant 1 : index
    %c0_93 = arith.constant 0 : index
    %c0_94 = arith.constant 0 : index
    %155 = vector.load %arg12[%c1_92, %c0_93, %c0_94] : memref<3x3x3xf32, #tpu.memory_space<vmem>>, vector<1x3x3xf32>
    %156 = vector.shape_cast %155 : vector<1x3x3xf32> to vector<3x3xf32>
    %cst_95 = arith.constant dense<0.000000e+00> : vector<32x3xf32>
    %157 = tpu.matmul %154, %156, %cst_95 {dimension_numbers = #tpu.dot_dimension_numbers<[1], [0], [0], [1], [0, 0, 1, 1], [], []>} : vector<32x3xf32>, vector<3x3xf32>, vector<32x3xf32> -> vector<32x3xf32>
    %158 = arith.addf %149, %157 : vector<32x3xf32>
    %cst_96 = arith.constant 0.000000e+00 : f32
    %159 = vector.broadcast %cst_96 : f32 to vector<32x3xf32>
    %160 = arith.maximumf %158, %159 : vector<32x3xf32>
    %c0_97 = arith.constant 0 : index
    %c0_98 = arith.constant 0 : index
    %161 = vector.load %arg15[%c0_97, %c0_98] : memref<1x4xf32, #tpu.memory_space<vmem>>, vector<1x4xf32>
    %cst_99 = arith.constant 0.000000e+00 : f32
    %162 = vector.broadcast %cst_99 : f32 to vector<8x3xf32>
    %163 = tpu.concatenate %162, %160 in 0 : vector<8x3xf32>, vector<32x3xf32> -> vector<40x3xf32>
    %c2_100 = arith.constant 2 : index
    %c0_101 = arith.constant 0 : index
    %c0_102 = arith.constant 0 : index
    %164 = vector.load %arg14[%c2_100, %c0_101, %c0_102] : memref<3x3x4xf32, #tpu.memory_space<vmem>>, vector<1x3x4xf32>
    %165 = vector.shape_cast %164 : vector<1x3x4xf32> to vector<3x4xf32>
    %cst_103 = arith.constant dense<0.000000e+00> : vector<32x4xf32>
    %166 = tpu.matmul %160, %165, %cst_103 {dimension_numbers = #tpu.dot_dimension_numbers<[1], [0], [0], [1], [0, 0, 1, 1], [], []>} : vector<32x3xf32>, vector<3x4xf32>, vector<32x4xf32> -> vector<32x4xf32>
    %167 = vector.broadcast %161 : vector<1x4xf32> to vector<32x4xf32>
    %168 = arith.addf %166, %167 : vector<32x4xf32>
    %169 = vector.extract_strided_slice %163 {offsets = [0, 0], sizes = [32, 3], strides = [1, 1]} : vector<40x3xf32> to vector<32x3xf32>
    %cst_104 = arith.constant 0.000000e+00 : f32
    %170 = vector.shape_cast %130 : vector<32x1xi1> to vector<32x1xi1>
    %171 = vector.broadcast %170 : vector<32x1xi1> to vector<32x3xi1>
    %172 = vector.broadcast %cst_104 : f32 to vector<32x3xf32>
    %173 = arith.select %171, %169, %172 : vector<32x3xi1>, vector<32x3xf32>
    %c0_105 = arith.constant 0 : index
    %c0_106 = arith.constant 0 : index
    %c0_107 = arith.constant 0 : index
    %174 = vector.load %arg14[%c0_105, %c0_106, %c0_107] : memref<3x3x4xf32, #tpu.memory_space<vmem>>, vector<1x3x4xf32>
    %175 = vector.shape_cast %174 : vector<1x3x4xf32> to vector<3x4xf32>
    %cst_108 = arith.constant dense<0.000000e+00> : vector<32x4xf32>
    %176 = tpu.matmul %173, %175, %cst_108 {dimension_numbers = #tpu.dot_dimension_numbers<[1], [0], [0], [1], [0, 0, 1, 1], [], []>} : vector<32x3xf32>, vector<3x4xf32>, vector<32x4xf32> -> vector<32x4xf32>
    %177 = arith.addf %168, %176 : vector<32x4xf32>
    %178 = vector.extract_strided_slice %163 {offsets = [4, 0], sizes = [32, 3], strides = [1, 1]} : vector<40x3xf32> to vector<32x3xf32>
    %cst_109 = arith.constant 0.000000e+00 : f32
    %179 = vector.shape_cast %132 : vector<32x1xi1> to vector<32x1xi1>
    %180 = vector.broadcast %179 : vector<32x1xi1> to vector<32x3xi1>
    %181 = vector.broadcast %cst_109 : f32 to vector<32x3xf32>
    %182 = arith.select %180, %178, %181 : vector<32x3xi1>, vector<32x3xf32>
    %c1_110 = arith.constant 1 : index
    %c0_111 = arith.constant 0 : index
    %c0_112 = arith.constant 0 : index
    %183 = vector.load %arg14[%c1_110, %c0_111, %c0_112] : memref<3x3x4xf32, #tpu.memory_space<vmem>>, vector<1x3x4xf32>
    %184 = vector.shape_cast %183 : vector<1x3x4xf32> to vector<3x4xf32>
    %cst_113 = arith.constant dense<0.000000e+00> : vector<32x4xf32>
    %185 = tpu.matmul %182, %184, %cst_113 {dimension_numbers = #tpu.dot_dimension_numbers<[1], [0], [0], [1], [0, 0, 1, 1], [], []>} : vector<32x3xf32>, vector<3x4xf32>, vector<32x4xf32> -> vector<32x4xf32>
    %186 = arith.addf %177, %185 : vector<32x4xf32>
    %c0_114 = arith.constant 0 : index
    %c0_115 = arith.constant 0 : index
    %187 = vector.load %arg16[%c0_114, %c0_115] : memref<3x4xf32, #tpu.memory_space<vmem>>, vector<3x4xf32>
    %cst_116 = arith.constant dense<0.000000e+00> : vector<32x4xf32>
    %188 = tpu.matmul %128, %187, %cst_116 {dimension_numbers = #tpu.dot_dimension_numbers<[1], [0], [0], [1], [0, 0, 1, 1], [], []>} : vector<32x3xf32>, vector<3x4xf32>, vector<32x4xf32> -> vector<32x4xf32>
    %c0_117 = arith.constant 0 : index
    %c0_118 = arith.constant 0 : index
    %189 = vector.load %arg17[%c0_117, %c0_118] : memref<1x4xf32, #tpu.memory_space<vmem>>, vector<1x4xf32>
    %190 = vector.broadcast %189 : vector<1x4xf32> to vector<32x4xf32>
    %191 = arith.addf %188, %190 : vector<32x4xf32>
    %192 = arith.addf %186, %191 : vector<32x4xf32>
    %c0_119 = arith.constant 0 : index
    %c0_120 = arith.constant 0 : index
    %193 = vector.load %arg18[%c0_119, %c0_120] : memref<32x4xf32, #tpu.memory_space<vmem>>, vector<32x4xf32>
    tpu.vector_store %arg18[%c0_119, %c0_120], %192 {strides = array<i32>} : memref<32x4xf32, #tpu.memory_space<vmem>>, vector<32x4xf32>,
    return
  }
}

</mosaic_0001>

<bundles_post_ra>
// kernel: tpu_custom_call.1
= control target key start
LH: loop header
LB: loop body
LE: loop exit
PB: predicated region body
PF: predicated region fallthrough
CT: control target
= control target key end

     0   :  { %s3562_s0 = inlined_call_operand.vmem [shape: s32[32,1], index: 0, kind: input, shape index: {}]   ;;  %s3563_s1 = inlined_call_operand.vmem [shape: f32[32,4], index: 1, kind: input, shape index: {}]   ;;  %s3564_s2 = inlined_call_operand.vmem [shape: f32[3,4,3], index: 2, kind: input, shape index: {}]   ;;  %s3565_s3 = inlined_call_operand.hbm [shape: f32[1,3], index: 3, kind: input, shape index: {}]   ;;  %s3566_s4 = inlined_call_operand.vmem [shape: f32[3,3,3], index: 4, kind: input, shape index: {}]   ;;  %s3567_s5 = inlined_call_operand.vmem [shape: f32[1,3], index: 5, kind: input, shape index: {}]   ;;  %s3568_s6 = inlined_call_operand.vmem [shape: f32[4,3], index: 6, kind: input, shape index: {}]   ;;  %s3569_s7 = inlined_call_operand.hbm [shape: f32[1,3], index: 7, kind: input, shape index: {}]   ;;  %s3570_s8 = inlined_call_operand.vmem [shape: f32[3,3,3], index: 8, kind: input, shape index: {}]   ;;  %s3571_s9 = inlined_call_operand.vmem [shape: f32[1,3], index: 9, kind: input, shape index: {}]   ;;  %s3572_s10 = inlined_call_operand.vmem [shape: f32[3,3,3], index: 10, kind: input, shape index: {}]   ;;  %s3573_s11 = inlined_call_operand.vmem [shape: f32[1,3], index: 11, kind: input, shape index: {}]   ;;  %s3574_s12 = inlined_call_operand.vmem [shape: f32[3,3,3], index: 12, kind: input, shape index: {}]   ;;  %s3575_s13 = inlined_call_operand.vmem [shape: f32[1,3], index: 13, kind: input, shape index: {}]   ;;  %s3576_s14 = inlined_call_operand.vmem [shape: f32[3,3,4], index: 14, kind: input, shape index: {}]   ;;  %s3577_s15 = inlined_call_operand.vmem [shape: f32[1,4], index: 15, kind: input, shape index: {}]   ;;  %s3578_s16 = inlined_call_operand.vmem [shape: f32[3,4], index: 16, kind: input, shape index: {}]   ;;  %s3579_s17 = inlined_call_operand.vmem [shape: f32[1,4], index: 17, kind: input, shape index: {}]   ;;  %s3580_s18 = inlined_call_operand.vmem [shape: f32[32,4], index: 18, kind: output, shape index: {}]  }
   0x1   :  { %3584 = sst [smem:[#allocation8_spill]] %s3562_s0 }
   0x2   :  { %3585 = sst [smem:[#allocation9_spill]] %s3563_s1 }
   0x3   :  { %3586 = sst [smem:[#allocation10_spill]] %s3564_s2 }
   0x4   :  { %23 = vsyncpa [#allocation3], 0 }
   0x5   :  { %24 = vsyncpa [#allocation5], 0  ;;  %s2935_s27 = smov [#allocation2]   ;;  %s2936_s29 = smov [#allocation4]  }
   0x6   :  { %s37_s28 = sshll.u32 %s2935_s27, 4  ;;  %s53_s30 = sshll.u32 %s2936_s29, 4  ;;  %s38_s28 = int_to_ptr.vmem [resolvable:$true] %s37_s28  ;;  %s54_s30 = int_to_ptr.vmem [resolvable:$true] %s53_s30 }
   0x7   :  { %s2899_s0 = scalar_lea.vmem %s38_s28, 16  ;;  %s2903_s19 = scalar_lea.vmem %s38_s28, 32 }
   0x8   :  { %p2900_p0 = scmp.ne.s32.totalorder %s38_s28, %s2899_s0  ;;  %p2904_p1 = scmp.lt.s32.totalorder %s38_s28, %s38_s28 }
   0x9   :  { %p2905_p2 = scmp.lt.s32.totalorder %s2903_s19, %s2899_s0 }
   0xb   :  { %p2906_p3 = por %p2905_p2, %p2904_p1 }
   0xd   :  { %p2907_p4 = pnand %p2906_p3, %p2900_p0 }
   0xf   :  { %2910 = shalt.err (!%p2907_p4)
}
  0x10   :  { %40 = dma.hbm_to_vmem [thread:$0]  %s3565_s3, 16, %s38_s28, [#allocation3]  }
  0x11   :  { %s2919_s21 = scalar_lea.vmem %s54_s30, 16  ;;  %s2923_s22 = scalar_lea.vmem %s54_s30, 32 }
  0x12   :  { %p2920_p5 = scmp.ne.s32.totalorder %s54_s30, %s2919_s21  ;;  %p2924_p6 = scmp.lt.s32.totalorder %s54_s30, %s54_s30 }
  0x13   :  { %p2925_p7 = scmp.lt.s32.totalorder %s2923_s22, %s2919_s21 }
  0x15   :  { %p2926_p8 = por %p2925_p7, %p2924_p6 }
  0x17   :  { %p2927_p9 = pnand %p2926_p8, %p2920_p5 }
  0x19   :  { %2930 = shalt.err (!%p2927_p9)
}
  0x1a   :  { %56 = dma.hbm_to_vmem [thread:$0]  %s3569_s7, 16, %s54_s30, [#allocation5]  }
  0x1b   :  { %2931 = dma.done.wait [#allocation3], 16  }
  0x1c   :  { %2932 = vsyncadd [#allocation3], 4294967280 }
  0x1d   :  { %2933 = dma.done.wait [#allocation5], 16  }
  0x1e   :  { %2934 = vsyncadd [#allocation5], 4294967280  ;;  %v2937_v0 = vmov 0   ;;  %vm108_vm0 = vcmask 31744   ;;  %s3587_s25 = sld [smem:[#allocation8_spill]]  ;;  %vm121_vm1 = vcmask 1043456  }
  0x1f   :  { %2890 = vset.pattern.permute.xlu1 %v2937_v0  ;;  %2889 = vset.pattern.permute.xlu0 %v2937_v0  ;;  %s3588_s29 = sld [smem:[#allocation9_spill]]  ;;  %v2938_v27 = vmov 0.0   ;;  %v2525_v62 = vld [vmem:[%s3566_s4 + $0x8] sm:$0x7]  ;;  %v629_v63 = vld [vmem:[%s3566_s4] sm:$0x7] }
  0x20   :  { %s3589_s22 = sld [smem:[#allocation10_spill]]  ;;  %v3113_v28 = vrot.slane %v2938_v27, 7  ;;  %v3117_v30 = vrot.slane %v2938_v27, 6 }
  0x24   :  { %v83_v1 = vld [vmem:[%s3587_s25] sm:$0xff]  ;;  %v84_v2 = vld [vmem:[%s3587_s25 + $0x8] sm:$0xff]  ;;  %v85_v6 = vld [vmem:[%s3587_s25 + $0x10] sm:$0xff] }
  0x25   :  { %vm95_vm2 = vcmp.ge.s32.totalorder %v83_v1, 2  ;;  %vm91_vm3 = vcmp.ge.s32.totalorder %v83_v1, 1  ;;  %vm96_vm4 = vcmp.ge.s32.totalorder %v84_v2, 2  ;;  %vm92_vm5 = vcmp.ge.s32.totalorder %v84_v2, 1  ;;  %v3051_v3 = vld [vmem:[%s3588_s29] sm:$0xff]  ;;  %v86_v7 = vld [vmem:[%s3587_s25 + $0x18] sm:$0xff] }
  0x26   :  { %v210_v4 = vsel %vm95_vm2, 1, %v2937_v0  ;;  %v354_v5 = vsel %vm91_vm3, 1, %v2937_v0  ;;  %v2507_v8 = vld [vmem:[%s3589_s22 + $0x8] sm:$0xf]  ;;  %2727 = vmatprep.mubr.msk.f32.mxu0 %vm108_vm0, %v3051_v3  ;;  %v211_v10 = vsel %vm96_vm4, 1, %v2937_v0  ;;  %v355_v11 = vsel %vm92_vm5, 1, %v2937_v0 }
  0x27   :  { %215 = vperm.xlu0 %2889, %v210_v4   ;;  %359 = vperm.xlu1 %2890, %v354_v5   ;;  %v3069_v9 = vld [vmem:[%s3588_s29 + $0x8] sm:$0xff]  ;;  %vm97_vm6 = vcmp.ge.s32.totalorder %v85_v6, 2  ;;  %vm98_vm7 = vcmp.ge.s32.totalorder %v86_v7, 2  ;;  %v3078_v12 = vld [vmem:[%s3588_s29 + $0x10] sm:$0xff]  ;;  %v2519_v13 = vld [vmem:[%s3589_s22 + $0x4] sm:$0xf] }
  0x28   :  { %2725 = vmatprep.subr.msk.mxu0 %vm121_vm1, %v2507_v8  ;;  %v249_v14 = vld [vmem:[%s3589_s22] sm:$0xf]  ;;  %v3092_v15 = vld [vmem:[%s3588_s29 + $0x18] sm:$0xff]  ;;  %v212_v16 = vsel %vm97_vm6, 1, %v2937_v0  ;;  %v213_v17 = vsel %vm98_vm7, 1, %v2937_v0  ;;  %vm93_vm8 = vcmp.ge.s32.totalorder %v85_v6, 1 }
  0x29   :  { %2726 = vmatpush3.msk.msra.mxu0 %vm121_vm1, %v2507_v8  ;;  %vm94_vm9 = vcmp.ge.s32.totalorder %v86_v7, 1  ;;  %2733 = vmatprep.subr.msk.mxu1 %vm121_vm1, %v249_v14  ;;  %v356_v18 = vsel %vm93_vm8, 1, %v2937_v0  ;;  %vm960_vm10 = vcmp.ge.s32.totalorder %v83_v1, 4  ;;  %vm961_vm11 = vcmp.ge.s32.totalorder %v84_v2, 4  ;;  %v860_v1 = vld [vmem:[%s3568_s6] sm:$0xf] }
  0x2a   :  { %2728 = vmatmul.mubr.msk.f32.vlgmr.msra.gmra.mxu0 %vm108_vm0, %v3069_v9  ;;  %2741 = vmatprep.subr.msk.mxu0 %vm121_vm1, %v2519_v13  ;;  %v357_v19 = vsel %vm94_vm9, 1, %v2937_v0  ;;  %v1073_v20 = vsel %vm960_vm10, 1, %v2937_v0  ;;  %v1074_v21 = vsel %vm961_vm11, 1, %v2937_v0  ;;  %vm962_vm12 = vcmp.ge.s32.totalorder %v85_v6, 4 }
  0x2b   :  { %218 = vperm.xlu0 %2889, %v211_v10   ;;  %362 = vperm.xlu1 %2890, %v355_v11   ;;  %vm963_vm13 = vcmp.ge.s32.totalorder %v86_v7, 4  ;;  %v1075_v22 = vsel %vm962_vm12, 1, %v2937_v0  ;;  %vm1701_vm14 = vcmp.ge.s32.totalorder %v84_v2, 8  ;;  %vm1702_vm15 = vcmp.ge.s32.totalorder %v85_v6, 8  ;;  %v2508_v6 = vld [vmem:[#allocation2] ss:$0 sm:$0xff] }
  0x2c   :  { %2730 = vmatprep.mubr.msk.f32.mxu0 %vm108_vm0, %v3078_v12  ;;  %2742 = vmatpush3.msk.msra.mxu0 %vm121_vm1, %v2519_v13  ;;  %v1076_v23 = vsel %vm963_vm13, 1, %v2937_v0  ;;  %v1813_v24 = vsel %vm1701_vm14, 1, %v2937_v0  ;;  %v1814_v25 = vsel %vm1702_vm15, 1, %v2937_v0  ;;  %vm1703_vm2 = vcmp.ge.s32.totalorder %v86_v7, 8 }
  0x2d   :  { %2734 = vmatpush3.msk.msra.mxu1 %vm121_vm1, %v249_v14  ;;  %v1815_v26 = vsel %vm1703_vm2, 1, %v2937_v0  ;;  %v376_v29 = vrot.slane %v3051_v3, 7  ;;  %v233_v31 = vrot.slane %v3051_v3, 6  ;;  %vm374_vm3 = vcmask 1040384   ;;  %v2537_v0 = vld [vmem:[%s3566_s4 + $0x4] sm:$0x7] }
  0x2e   :  { %2731 = vmatmul.mubr.msk.f32.gmra.mxu0 %vm108_vm0, %v3092_v15  ;;  %vm231_vm4 = vcmask 1041408   ;;  %v235_v32 = vrot.slane %v3069_v9, 6  ;;  %v378_v35 = vrot.slane %v3069_v9, 7  ;;  %v237_v40 = vrot.slane %v3078_v12, 6 }
  0x2f   :  { %221 = vperm.xlu0 %2889, %v212_v16   ;;  %224 = vperm.xlu1 %2890, %v213_v17   ;;  %v377_v33 = vsel %vm374_vm3, %v3113_v28, %v376_v29  ;;  %v234_v34 = vsel %vm231_vm4, %v3117_v30, %v233_v31  ;;  %v239_v41 = vrot.slane %v3092_v15, 6  ;;  %v380_v49 = vrot.slane %v3078_v12, 7 }
  0x30   :  { %v379_v42 = vsel %vm374_vm3, %v376_v29, %v378_v35  ;;  %v236_v43 = vsel %vm231_vm4, %v233_v31, %v235_v32  ;;  %v238_v48 = vsel %vm231_vm4, %v235_v32, %v237_v40  ;;  %v382_v51 = vrot.slane %v3092_v15, 7 }
  0x31   :  { %v240_v50 = vsel %vm231_vm4, %v237_v40, %v239_v41  ;;  %v381_v56 = vsel %vm374_vm3, %v378_v35, %v380_v49  ;;  %vm524_vm13 = vcmask 1042432   ;;  %vm511_vm14 = vcmask 23552  }
  0x32   :  { %v383_v57 = vsel %vm374_vm3, %v380_v49, %v382_v51  ;;  %2749 = vmatprep.subr.msk.mxu1 %vm524_vm13, %v2525_v62  ;;  %2757 = vmatprep.subr.msk.mxu0 %vm524_vm13, %v629_v63 }
  0x33   :  { %365 = vperm.xlu0 %2889, %v356_v18   ;;  %368 = vperm.xlu1 %2890, %v357_v19  }
  0x37   :  { %1078 = vperm.xlu0 %2889, %v1073_v20   ;;  %1081 = vperm.xlu1 %2890, %v1074_v21  }
  0x3b   :  { %1084 = vperm.xlu0 %2889, %v1075_v22   ;;  %1087 = vperm.xlu1 %2890, %v1076_v23  }
  0x3f   :  { %1817 = vperm.xlu0 %2889, %v1813_v24   ;;  %1820 = vperm.xlu1 %2890, %v1814_v25  }
  0x43   :  { %1823 = vperm.xlu0 %2889, %v1815_v26  }
  0xa2   :  { %v3126_v36 = vpop.permute.xlu0 %215  ;;  %v3128_v37 = vpop.permute.xlu1 %359 }
  0xa3   :  { %vm226_vm5 = vcmp.eq.s32.totalorder %v3126_v36, 1  ;;  %vm370_vm6 = vcmp.eq.s32.totalorder %v3128_v37, 1 }
  0xa4   :  { %v388_v38 = vsel %vm370_vm6, %v377_v33, 0.0  ;;  %v245_v39 = vsel %vm226_vm5, %v234_v34, 0.0 }
  0xa5   :  { %2735 = vmatprep.mubr.msk.f32.mxu1 %vm108_vm0, %v245_v39  ;;  %2743 = vmatprep.mubr.msk.f32.mxu0 %vm108_vm0, %v388_v38 }
  0xa6   :  { %v3142_v44 = vpop.permute.xlu0 %218  ;;  %v3144_v45 = vpop.permute.xlu1 %362 }
  0xa7   :  { %vm227_vm7 = vcmp.eq.s32.totalorder %v3142_v44, 1  ;;  %vm371_vm8 = vcmp.eq.s32.totalorder %v3144_v45, 1  ;;  %v2549_v45 = vld [vmem:[%s3570_s8 + $0x8] sm:$0x7] }
  0xa8   :  { %v389_v46 = vsel %vm371_vm8, %v379_v42, 0.0  ;;  %v246_v47 = vsel %vm227_vm7, %v236_v43, 0.0  ;;  %v2585_v44 = vld [vmem:[%s3574_s12 + $0x8] sm:$0x7] }
  0xa9   :  { %2736 = vmatmul.mubr.msk.f32.vlgmr.msra.gmra.mxu1 %vm108_vm0, %v246_v47  ;;  %2744 = vmatmul.mubr.msk.f32.vlgmr.msra.gmra.mxu0 %vm108_vm0, %v389_v46 }
  0xaa   :  { %v3158_v52 = vpop.permute.xlu0 %221  ;;  %v3160_v53 = vpop.permute.xlu1 %224  ;;  %2750 = vmatpush3.msk.msra.mxu1 %vm524_vm13, %v2525_v62  ;;  %2758 = vmatpush3.msk.msra.mxu0 %vm524_vm13, %v629_v63 }
  0xab   :  { %vm228_vm9 = vcmp.eq.s32.totalorder %v3158_v52, 1  ;;  %vm229_vm10 = vcmp.eq.s32.totalorder %v3160_v53, 1  ;;  %2765 = vmatprep.subr.msk.mxu1 %vm524_vm13, %v2537_v0  ;;  %2773 = vmatprep.subr.msk.mxu0 %vm121_vm1, %v860_v1  ;;  %v1831_v52 = vld [vmem:[%s3574_s12] sm:$0x7]  ;;  %v2596_v53 = vld [vmem:[%s3574_s12 + $0x4] sm:$0x7] }
  0xac   :  { %v247_v54 = vsel %vm228_vm9, %v238_v48, 0.0  ;;  %v248_v55 = vsel %vm229_vm10, %v240_v50, 0.0 }
  0xad   :  { %2738 = vmatprep.mubr.msk.f32.mxu1 %vm108_vm0, %v247_v54 }
  0xae   :  { %v3171_v58 = vpop.permute.xlu0 %365  ;;  %2739 = vmatmul.mubr.msk.f32.gmra.mxu1 %vm108_vm0, %v248_v55  ;;  %v3174_v59 = vpop.permute.xlu1 %368 }
  0xaf   :  { %vm372_vm11 = vcmp.eq.s32.totalorder %v3171_v58, 1  ;;  %vm373_vm12 = vcmp.eq.s32.totalorder %v3174_v59, 1 }
  0xb0   :  { %v390_v60 = vsel %vm372_vm11, %v381_v56, 0.0  ;;  %v391_v61 = vsel %vm373_vm12, %v383_v57, 0.0 }
  0xb1   :  { %2746 = vmatprep.mubr.msk.f32.mxu0 %vm108_vm0, %v390_v60 }
  0xb2   :  { %2747 = vmatmul.mubr.msk.f32.gmra.mxu0 %vm108_vm0, %v391_v61 }
  0xea   :  { %v2729_v2 = vpop.f32.mrf.mxu0 }
  0xeb   :  { %v197_v8 = vadd.f32 %v2729_v2, %v2508_v6 }
  0xec   :  { %v191_v4 = vpop.f32.mrf.mxu0 }
  0xed   :  { %v192_v13 = vadd.f32 %v2508_v6, %v191_v4 }
  0xee   :  { %v2732_v5 = vpop.f32.mrf.mxu0 }
  0xef   :  { %v207_v23 = vadd.f32 %v2732_v5, %v2508_v6 }
  0xf0   :  { %v201_v7 = vpop.f32.mrf.mxu0 }
  0xf1   :  { %v202_v26 = vadd.f32 %v2508_v6, %v201_v7 }
 0x169   :  { %v2737_v10 = vpop.f32.mrf.mxu1  ;;  %v2745_v11 = vpop.f32.mrf.mxu0 }
 0x16a   :  { %v351_v14 = vadd.f32 %v2737_v10, %v197_v8 }
 0x16b   :  { %v331_v16 = vpop.f32.mrf.mxu1  ;;  %v475_v19 = vpop.f32.mrf.mxu0 }
 0x16c   :  { %v495_v17 = vadd.f32 %v2745_v11, %v351_v14  ;;  %v350_v18 = vadd.f32 %v331_v16, %v192_v13 }
 0x16e   :  { %v499_v20 = vmax.f32 %v495_v17, 0.0  ;;  %v494_v21 = vadd.f32 %v475_v19, %v350_v18  ;;  %v2740_v22 = vpop.f32.mrf.mxu1 }
 0x16f   :  { %v353_v29 = vadd.f32 %v2740_v22, %v207_v23 }
 0x170   :  { %v498_v24 = vmax.f32 %v494_v21, 0.0  ;;  %v341_v25 = vpop.f32.mrf.mxu1  ;;  %v615_v31 = vrot.slane %v499_v20, 6  ;;  %v736_v50 = vrot.slane %v499_v20, 7  ;;  %v2543_v21 = vld [vmem:[#allocation4] ss:$0 sm:$0xff] }
 0x171   :  { %v352_v35 = vadd.f32 %v341_v25, %v202_v26 }
 0x172   :  { %v613_v32 = vrot.slane %v498_v24, 6  ;;  %v2748_v33 = vpop.f32.mrf.mxu0  ;;  %2751 = vmatprep.mubr.msk.f32.mxu1 %vm511_vm14, %v498_v24  ;;  %v734_v34 = vrot.slane %v498_v24, 7 }
 0x173   :  { %v497_v38 = vadd.f32 %v2748_v33, %v353_v29  ;;  %2752 = vmatmul.mubr.msk.f32.vlgmr.msra.gmra.mxu1 %vm511_vm14, %v499_v20 }
 0x174   :  { %v485_v39 = vpop.f32.mrf.mxu0  ;;  %v614_v40 = vsel %vm231_vm4, %v3117_v30, %v613_v32  ;;  %v616_v41 = vsel %vm231_vm4, %v613_v32, %v615_v31  ;;  %2766 = vmatpush3.msk.msra.mxu1 %vm524_vm13, %v2537_v0  ;;  %v735_v49 = vsel %vm374_vm3, %v3113_v28, %v734_v34  ;;  %v737_v57 = vsel %vm374_vm3, %v734_v34, %v736_v50 }
 0x175   :  { %v501_v42 = vmax.f32 %v497_v38, 0.0  ;;  %v496_v43 = vadd.f32 %v485_v39, %v352_v35  ;;  %v625_v46 = vsel %vm226_vm5, %v614_v40, 0.0  ;;  %v626_v47 = vsel %vm227_vm7, %v616_v41, 0.0  ;;  %2781 = vmatprep.subr.msk.mxu1 %vm524_vm13, %v2549_v45  ;;  %v3267_v38 = vpop.permute.xlu0 %1078 }
 0x176   :  { %2759 = vmatprep.mubr.msk.f32.mxu0 %vm511_vm14, %v625_v46  ;;  %v746_v56 = vsel %vm370_vm6, %v735_v49, 0.0  ;;  %v747_v37 = vsel %vm371_vm8, %v737_v57, 0.0  ;;  %vm1089_vm15 = vcmp.eq.s32.totalorder %v3267_v38, 1 }
 0x177   :  { %v500_v48 = vmax.f32 %v496_v43, 0.0  ;;  %2760 = vmatmul.mubr.msk.f32.vlgmr.msra.gmra.mxu0 %vm511_vm14, %v626_v47  ;;  %v619_v51 = vrot.slane %v501_v42, 6  ;;  %v740_v62 = vrot.slane %v501_v42, 7  ;;  %v3271_v43 = vpop.permute.xlu1 %1081 }
 0x178   :  { %2774 = vmatpush3.msk.msra.mxu0 %vm121_vm1, %v860_v1  ;;  %vm1090_vm2 = vcmp.eq.s32.totalorder %v3271_v43, 1 }
 0x179   :  { %v617_v54 = vrot.slane %v500_v48, 6  ;;  %v738_v55 = vrot.slane %v500_v48, 7  ;;  %2754 = vmatprep.mubr.msk.f32.mxu1 %vm511_vm14, %v500_v48  ;;  %v3276_v48 = vrot.slane %v2938_v27, 4 }
 0x17a   :  { %2755 = vmatmul.mubr.msk.f32.gmra.mxu1 %vm511_vm14, %v501_v42 }
 0x17b   :  { %2767 = vmatprep.mubr.msk.f32.mxu1 %vm511_vm14, %v746_v56  ;;  %v618_v60 = vsel %vm231_vm4, %v615_v31, %v617_v54  ;;  %v620_v28 = vsel %vm231_vm4, %v617_v54, %v619_v51  ;;  %v739_v61 = vsel %vm374_vm3, %v736_v50, %v738_v55  ;;  %v741_v2 = vsel %vm374_vm3, %v738_v55, %v740_v62 }
 0x17c   :  { %v627_v63 = vsel %vm228_vm9, %v618_v60, 0.0  ;;  %v628_v0 = vsel %vm229_vm10, %v620_v28, 0.0  ;;  %v748_v1 = vsel %vm372_vm11, %v739_v61, 0.0  ;;  %v749_v4 = vsel %vm373_vm12, %v741_v2, 0.0  ;;  %v3289_v61 = vpop.permute.xlu0 %1084 }
 0x17d   :  { %2762 = vmatprep.mubr.msk.f32.mxu0 %vm511_vm14, %v627_v63  ;;  %vm1091_vm3 = vcmp.eq.s32.totalorder %v3289_v61, 1  ;;  %v2603_v61 = vld [vmem:[%s3577_s15] ss:$0 sm:$0xff] }
 0x17e   :  { %2763 = vmatmul.mubr.msk.f32.gmra.mxu0 %vm511_vm14, %v628_v0  ;;  %2768 = vmatmul.mubr.msk.f32.vlgmr.msra.gmra.mxu1 %vm511_vm14, %v747_v37 }
 0x17f   :  { %2770 = vmatprep.mubr.msk.f32.mxu1 %vm511_vm14, %v748_v1  ;;  %2775 = vmatprep.mubr.msk.f32.mxu0 %vm108_vm0, %v3051_v3  ;;  %v1110_v3 = vld [vmem:[%s3570_s8] sm:$0x7]  ;;  %v3299_v1 = vpop.permute.xlu1 %1087 }
 0x180   :  { %2782 = vmatpush3.msk.msra.mxu1 %vm524_vm13, %v2549_v45  ;;  %2789 = vmatprep.subr.msk.mxu0 %vm524_vm13, %v1110_v3  ;;  %vm1092_vm6 = vcmp.eq.s32.totalorder %v3299_v1, 1 }
 0x182   :  { %2771 = vmatmul.mubr.msk.f32.gmra.mxu1 %vm511_vm14, %v749_v4  ;;  %2776 = vmatmul.mubr.msk.f32.vlgmr.msra.gmra.mxu0 %vm108_vm0, %v3069_v9  ;;  %v2561_v9 = vld [vmem:[%s3570_s8 + $0x4] sm:$0x7] }
 0x183   :  { %2778 = vmatprep.mubr.msk.f32.mxu0 %vm108_vm0, %v3078_v12  ;;  %2790 = vmatpush3.msk.msra.mxu0 %vm524_vm13, %v1110_v3 }
 0x184   :  { %2797 = vmatprep.subr.msk.mxu1 %vm524_vm13, %v2561_v9 }
 0x186   :  { %2779 = vmatmul.mubr.msk.f32.gmra.mxu0 %vm108_vm0, %v3092_v15  ;;  %v2526_v15 = vld [vmem:[%s3567_s5] ss:$0 sm:$0xff] }
 0x233   :  { %v2753_v12 = vpop.f32.mrf.mxu1 }
 0x234   :  { %v600_v6 = vadd.f32 %v2753_v12, %v2526_v15 }
 0x235   :  { %v594_v58 = vpop.f32.mrf.mxu1 }
 0x236   :  { %v595_v10 = vadd.f32 %v2526_v15, %v594_v58 }
 0x237   :  { %v2761_v59 = vpop.f32.mrf.mxu0 }
 0x238   :  { %v731_v11 = vadd.f32 %v2761_v59, %v600_v6 }
 0x239   :  { %v711_v7 = vpop.f32.mrf.mxu0 }
 0x23a   :  { %v2756_v5 = vpop.f32.mrf.mxu1  ;;  %v730_v16 = vadd.f32 %v711_v7, %v595_v10 }
 0x23b   :  { %v610_v18 = vadd.f32 %v2756_v5, %v2526_v15 }
 0x23c   :  { %v604_v8 = vpop.f32.mrf.mxu1 }
 0x23d   :  { %v605_v22 = vadd.f32 %v2526_v15, %v604_v8 }
 0x23e   :  { %v2764_v13 = vpop.f32.mrf.mxu0  ;;  %v2769_v14 = vpop.f32.mrf.mxu1 }
 0x23f   :  { %v853_v17 = vadd.f32 %v2769_v14, %v731_v11  ;;  %v733_v24 = vadd.f32 %v2764_v13, %v610_v18  ;;  %v1466_v18 = vld [vmem:[%s3572_s10] sm:$0x7] }
 0x240   :  { %v721_v19 = vpop.f32.mrf.mxu0  ;;  %v833_v20 = vpop.f32.mrf.mxu1 }
 0x241   :  { %v852_v23 = vadd.f32 %v833_v20, %v730_v16  ;;  %v857_v29 = vmax.f32 %v853_v17, 0.0  ;;  %v732_v31 = vadd.f32 %v721_v19, %v605_v22  ;;  %v2567_v17 = vld [vmem:[%s3572_s10 + $0x8] sm:$0x7]  ;;  %v2579_v19 = vld [vmem:[%s3572_s10 + $0x4] sm:$0x7] }
 0x242   :  { %v2772_v25 = vpop.f32.mrf.mxu1  ;;  %v2777_v26 = vpop.f32.mrf.mxu0  ;;  %2805 = vmatprep.subr.msk.mxu0 %vm524_vm13, %v2567_v17 }
 0x243   :  { %v943_v32 = vadd.f32 %v2777_v26, %v2543_v21  ;;  %v855_v33 = vadd.f32 %v2772_v25, %v733_v24  ;;  %v856_v39 = vmax.f32 %v852_v23, 0.0 }
 0x244   :  { %v843_v34 = vpop.f32.mrf.mxu1  ;;  %v937_v35 = vpop.f32.mrf.mxu0 }
 0x245   :  { %v3269_v40 = vadd.f32 %v943_v32, %v857_v29  ;;  %v854_v41 = vadd.f32 %v843_v34, %v732_v31  ;;  %v938_v42 = vadd.f32 %v2543_v21, %v937_v35  ;;  %v859_v49 = vmax.f32 %v855_v33, 0.0 }
 0x246   :  { %v2780_v46 = vpop.f32.mrf.mxu0 }
 0x247   :  { %v3273_v47 = vadd.f32 %v938_v42, %v856_v39  ;;  %v1096_v50 = vrot.slane %v3269_v40, 4  ;;  %v953_v51 = vadd.f32 %v2780_v46, %v2543_v21  ;;  %v858_v55 = vmax.f32 %v854_v41, 0.0 }
 0x248   :  { %v947_v54 = vpop.f32.mrf.mxu0  ;;  %v1217_v2 = vrot.slane %v3269_v40, 6 }
 0x249   :  { %v948_v56 = vadd.f32 %v2543_v21, %v947_v54  ;;  %2783 = vmatprep.mubr.msk.f32.mxu1 %vm511_vm14, %v3273_v47  ;;  %v1094_v57 = vrot.slane %v3273_v47, 4  ;;  %v1215_v60 = vrot.slane %v3273_v47, 6  ;;  %v3285_v28 = vadd.f32 %v953_v51, %v859_v49  ;;  %v2550_v21 = vld [vmem:[%s3571_s9] ss:$0 sm:$0xff] }
 0x24a   :  { %2784 = vmatmul.mubr.msk.f32.vlgmr.msra.gmra.mxu1 %vm511_vm14, %v3269_v40 }
 0x24b   :  { %v3291_v62 = vadd.f32 %v948_v56, %v858_v55  ;;  %2798 = vmatpush3.msk.msra.mxu1 %vm524_vm13, %v2561_v9  ;;  %v1095_v63 = vsel %vm121_vm1, %v3276_v48, %v1094_v57  ;;  %v1097_v0 = vsel %vm121_vm1, %v1094_v57, %v1096_v50  ;;  %v1216_v37 = vsel %vm231_vm4, %v3117_v30, %v1215_v60 }
 0x24c   :  { %v1106_v4 = vsel %vm1089_vm15, %v1095_v63, 0.0  ;;  %v1107_v45 = vsel %vm1090_vm2, %v1097_v0, 0.0  ;;  %v1100_v9 = vrot.slane %v3285_v28, 4  ;;  %v1227_v15 = vsel %vm226_vm5, %v1216_v37, 0.0  ;;  %2813 = vmatprep.subr.msk.mxu1 %vm524_vm13, %v1466_v18 }
 0x24d   :  { %2786 = vmatprep.mubr.msk.f32.mxu1 %vm511_vm14, %v3291_v62  ;;  %2791 = vmatprep.mubr.msk.f32.mxu0 %vm511_vm14, %v1106_v4  ;;  %v1098_v3 = vrot.slane %v3291_v62, 4  ;;  %v1219_v12 = vrot.slane %v3291_v62, 6  ;;  %v1218_v58 = vsel %vm231_vm4, %v1215_v60, %v1217_v2  ;;  %v1221_v10 = vrot.slane %v3285_v28, 6 }
 0x24e   :  { %2787 = vmatmul.mubr.msk.f32.gmra.mxu1 %vm511_vm14, %v3285_v28  ;;  %2792 = vmatmul.mubr.msk.f32.vlgmr.msra.gmra.mxu0 %vm511_vm14, %v1107_v45  ;;  %v1228_v11 = vsel %vm227_vm7, %v1218_v58, 0.0 }
 0x24f   :  { %2799 = vmatprep.mubr.msk.f32.mxu1 %vm511_vm14, %v1227_v15  ;;  %v1099_v59 = vsel %vm121_vm1, %v1096_v50, %v1098_v3  ;;  %v1101_v5 = vsel %vm121_vm1, %v1098_v3, %v1100_v9  ;;  %v1220_v6 = vsel %vm231_vm4, %v1217_v2, %v1219_v12  ;;  %v1222_v14 = vsel %vm231_vm4, %v1219_v12, %v1221_v10 }
 0x250   :  { %v1108_v7 = vsel %vm1091_vm3, %v1099_v59, 0.0  ;;  %v1109_v8 = vsel %vm1092_vm6, %v1101_v5, 0.0  ;;  %v1229_v13 = vsel %vm228_vm9, %v1220_v6, 0.0  ;;  %v1230_v16 = vsel %vm229_vm10, %v1222_v14, 0.0  ;;  %2806 = vmatpush3.msk.msra.mxu0 %vm524_vm13, %v2567_v17 }
 0x251   :  { %2794 = vmatprep.mubr.msk.f32.mxu0 %vm511_vm14, %v1108_v7  ;;  %2821 = vmatprep.subr.msk.mxu0 %vm524_vm13, %v2579_v19 }
 0x252   :  { %2795 = vmatmul.mubr.msk.f32.gmra.mxu0 %vm511_vm14, %v1109_v8  ;;  %2800 = vmatmul.mubr.msk.f32.vlgmr.msra.gmra.mxu1 %vm511_vm14, %v1228_v11 }
 0x253   :  { %2802 = vmatprep.mubr.msk.f32.mxu1 %vm511_vm14, %v1229_v13  ;;  %2814 = vmatpush3.msk.msra.mxu1 %vm524_vm13, %v1466_v18 }
 0x254   :  { %2829 = vmatprep.subr.msk.mxu1 %vm524_vm13, %v2585_v44 }
 0x256   :  { %2803 = vmatmul.mubr.msk.f32.gmra.mxu1 %vm511_vm14, %v1230_v16 }
 0x30a   :  { %v2785_v20 = vpop.f32.mrf.mxu1 }
 0x30b   :  { %v1060_v25 = vadd.f32 %v2785_v20, %v2550_v21 }
 0x30c   :  { %v1054_v22 = vpop.f32.mrf.mxu1 }
 0x30d   :  { %v1055_v31 = vadd.f32 %v2550_v21, %v1054_v22 }
 0x30e   :  { %v2788_v23 = vpop.f32.mrf.mxu1  ;;  %v2793_v24 = vpop.f32.mrf.mxu0 }
 0x30f   :  { %v1212_v32 = vadd.f32 %v2793_v24, %v1060_v25  ;;  %v1070_v35 = vadd.f32 %v2788_v23, %v2550_v21  ;;  %v2568_v23 = vld [vmem:[%s3573_s11] ss:$0 sm:$0xff] }
 0x310   :  { %v1064_v26 = vpop.f32.mrf.mxu1  ;;  %v1192_v29 = vpop.f32.mrf.mxu0 }
 0x311   :  { %v1211_v39 = vadd.f32 %v1192_v29, %v1055_v31  ;;  %v1065_v49 = vadd.f32 %v2550_v21, %v1064_v26 }
 0x312   :  { %v2796_v33 = vpop.f32.mrf.mxu0  ;;  %v2801_v34 = vpop.f32.mrf.mxu1 }
 0x313   :  { %v1334_v41 = vadd.f32 %v2801_v34, %v1212_v32  ;;  %v1214_v50 = vadd.f32 %v2796_v33, %v1070_v35 }
 0x314   :  { %v1202_v42 = vpop.f32.mrf.mxu0  ;;  %v1314_v46 = vpop.f32.mrf.mxu1 }
 0x315   :  { %v1333_v51 = vadd.f32 %v1314_v46, %v1211_v39  ;;  %v1338_v54 = vmax.f32 %v1334_v41, 0.0  ;;  %v1213_v56 = vadd.f32 %v1202_v42, %v1065_v49 }
 0x316   :  { %v2804_v55 = vpop.f32.mrf.mxu1 }
 0x317   :  { %v1337_v57 = vmax.f32 %v1333_v51, 0.0  ;;  %v1336_v60 = vadd.f32 %v2804_v55, %v1214_v50  ;;  %v1452_v45 = vrot.slane %v1338_v54, 4  ;;  %v1573_v12 = vrot.slane %v1338_v54, 6  ;;  %v3415_v51 = vpop.permute.xlu0 %1817 }
 0x318   :  { %v1324_v63 = vpop.f32.mrf.mxu1 }
 0x319   :  { %v1450_v0 = vrot.slane %v1337_v57, 4  ;;  %v1571_v37 = vrot.slane %v1337_v57, 6  ;;  %v1340_v2 = vmax.f32 %v1336_v60, 0.0  ;;  %v1335_v4 = vadd.f32 %v1324_v63, %v1213_v56  ;;  %2807 = vmatprep.mubr.msk.f32.mxu0 %vm511_vm14, %v1337_v57 }
 0x31a   :  { %2808 = vmatmul.mubr.msk.f32.vlgmr.msra.gmra.mxu0 %vm511_vm14, %v1338_v54 }
 0x31b   :  { %v1339_v3 = vmax.f32 %v1335_v4, 0.0  ;;  %2822 = vmatpush3.msk.msra.mxu0 %vm524_vm13, %v2579_v19  ;;  %v1451_v9 = vsel %vm121_vm1, %v3276_v48, %v1450_v0  ;;  %v1453_v58 = vsel %vm121_vm1, %v1450_v0, %v1452_v45  ;;  %v1572_v59 = vsel %vm231_vm4, %v3117_v30, %v1571_v37 }
 0x31c   :  { %v1462_v15 = vsel %vm1089_vm15, %v1451_v9, 0.0  ;;  %v1456_v5 = vrot.slane %v1340_v2, 4  ;;  %v1463_v8 = vsel %vm1090_vm2, %v1453_v58, 0.0  ;;  %v1583_v10 = vsel %vm226_vm5, %v1572_v59, 0.0  ;;  %2837 = vmatprep.subr.msk.mxu0 %vm524_vm13, %v1831_v52 }
 0x31d   :  { %v1454_v6 = vrot.slane %v1339_v3, 4  ;;  %v1575_v7 = vrot.slane %v1339_v3, 6  ;;  %2810 = vmatprep.mubr.msk.f32.mxu0 %vm511_vm14, %v1339_v3  ;;  %2815 = vmatprep.mubr.msk.f32.mxu1 %vm511_vm14, %v1462_v15  ;;  %v1574_v11 = vsel %vm231_vm4, %v1571_v37, %v1573_v12  ;;  %v1577_v16 = vrot.slane %v1340_v2, 6  ;;  %v3427_v15 = vpop.permute.xlu0 %1823 }
 0x31e   :  { %2811 = vmatmul.mubr.msk.f32.gmra.mxu0 %vm511_vm14, %v1340_v2  ;;  %2816 = vmatmul.mubr.msk.f32.vlgmr.msra.gmra.mxu1 %vm511_vm14, %v1463_v8  ;;  %v1584_v36 = vsel %vm227_vm7, %v1574_v11, 0.0  ;;  %v3417_v2 = vpop.permute.xlu1 %1820  ;;  %vm1827_vm7 = vcmp.eq.s32.totalorder %v3427_v15, 1 }
 0x31f   :  { %2823 = vmatprep.mubr.msk.f32.mxu0 %vm511_vm14, %v1583_v10  ;;  %v1455_v30 = vsel %vm121_vm1, %v1452_v45, %v1454_v6  ;;  %v1457_v13 = vsel %vm121_vm1, %v1454_v6, %v1456_v5  ;;  %v1576_v14 = vsel %vm231_vm4, %v1573_v12, %v1575_v7  ;;  %v1578_v20 = vsel %vm231_vm4, %v1575_v7, %v1577_v16 }
 0x320   :  { %v1464_v17 = vsel %vm1091_vm3, %v1455_v30, 0.0  ;;  %v1465_v18 = vsel %vm1092_vm6, %v1457_v13, 0.0  ;;  %v1585_v19 = vsel %vm228_vm9, %v1576_v14, 0.0  ;;  %v1586_v21 = vsel %vm229_vm10, %v1578_v20, 0.0  ;;  %2830 = vmatpush3.msk.msra.mxu1 %vm524_vm13, %v2585_v44  ;;  %v2397_v20 = vld [vmem:[%s3578_s16] sm:$0x7] }
 0x321   :  { %2818 = vmatprep.mubr.msk.f32.mxu1 %vm511_vm14, %v1464_v17  ;;  %2845 = vmatprep.subr.msk.mxu1 %vm524_vm13, %v2596_v53  ;;  %vm1825_vm4 = vcmp.eq.s32.totalorder %v3415_v51, 1  ;;  %vm1826_vm5 = vcmp.eq.s32.totalorder %v3417_v2, 1  ;;  %v2586_v44 = vld [vmem:[%s3575_s13] ss:$0 sm:$0xff] }
 0x322   :  { %2819 = vmatmul.mubr.msk.f32.gmra.mxu1 %vm511_vm14, %v1465_v18  ;;  %2824 = vmatmul.mubr.msk.f32.vlgmr.msra.gmra.mxu0 %vm511_vm14, %v1584_v36  ;;  %v2602_v36 = vld [vmem:[%s3576_s14 + $0x8] sm:$0x7] }
 0x323   :  { %2826 = vmatprep.mubr.msk.f32.mxu0 %vm511_vm14, %v1585_v19  ;;  %2838 = vmatpush3.msk.msra.mxu0 %vm524_vm13, %v1831_v52  ;;  %v2173_v19 = vld [vmem:[%s3576_s14] sm:$0x7] }
 0x324   :  { %2853 = vmatprep.subr.msk.mxu0 %vm524_vm13, %v2602_v36 }
 0x326   :  { %2827 = vmatmul.mubr.msk.f32.gmra.mxu0 %vm511_vm14, %v1586_v21 }
 0x327   :  { %2839 = vmatprep.mubr.f32.mxu0 %v2938_v27 }
 0x3da   :  { %v2809_v22 = vpop.f32.mrf.mxu0 }
 0x3db   :  { %v1437_v29 = vadd.f32 %v2809_v22, %v2568_v23 }
 0x3dc   :  { %v1431_v24 = vpop.f32.mrf.mxu0 }
 0x3dd   :  { %v1432_v33 = vadd.f32 %v2568_v23, %v1431_v24 }
 0x3de   :  { %v2812_v25 = vpop.f32.mrf.mxu0  ;;  %v2817_v26 = vpop.f32.mrf.mxu1 }
 0x3df   :  { %v1568_v34 = vadd.f32 %v2817_v26, %v1437_v29  ;;  %v1447_v41 = vadd.f32 %v2812_v25, %v2568_v23 }
 0x3e0   :  { %v1441_v31 = vpop.f32.mrf.mxu0  ;;  %v1548_v32 = vpop.f32.mrf.mxu1 }
 0x3e1   :  { %v1567_v42 = vadd.f32 %v1548_v32, %v1432_v33  ;;  %v1442_v54 = vadd.f32 %v2568_v23, %v1441_v31 }
 0x3e2   :  { %v2820_v35 = vpop.f32.mrf.mxu1  ;;  %v2825_v39 = vpop.f32.mrf.mxu0 }
 0x3e3   :  { %v1690_v46 = vadd.f32 %v2825_v39, %v1568_v34  ;;  %v1570_v55 = vadd.f32 %v2820_v35, %v1447_v41 }
 0x3e4   :  { %v1558_v49 = vpop.f32.mrf.mxu1  ;;  %v1670_v50 = vpop.f32.mrf.mxu0 }
 0x3e5   :  { %v1694_v56 = vmax.f32 %v1690_v46, 0.0  ;;  %v1689_v57 = vadd.f32 %v1670_v50, %v1567_v42  ;;  %v1569_v63 = vadd.f32 %v1558_v49, %v1442_v54 }
 0x3e6   :  { %v2828_v60 = vpop.f32.mrf.mxu0 }
 0x3e7   :  { %v1693_v0 = vmax.f32 %v1689_v57, 0.0  ;;  %v1692_v37 = vadd.f32 %v2828_v60, %v1570_v55  ;;  %v3420_v4 = vadd.f32 %v1694_v56, %v3269_v40 }
 0x3e8   :  { %v1680_v45 = vpop.f32.mrf.mxu0 }
 0x3e9   :  { %v3423_v3 = vadd.f32 %v1693_v0, %v3273_v47  ;;  %v1691_v9 = vadd.f32 %v1680_v45, %v1569_v63  ;;  %v1696_v12 = vmax.f32 %v1692_v37, 0.0  ;;  %v1829_v47 = vsel %vm1826_vm5, %v3420_v4, 0.0 }
 0x3ea   :  { %v1937_v7 = vrot.slane %v3420_v4, 4 }
 0x3eb   :  { %v1695_v58 = vmax.f32 %v1691_v9, 0.0  ;;  %2831 = vmatprep.mubr.msk.f32.mxu1 %vm511_vm14, %v3423_v3  ;;  %v1828_v40 = vsel %vm1825_vm4, %v3423_v3, 0.0  ;;  %v1935_v59 = vrot.slane %v3423_v3, 4  ;;  %v3451_v8 = vadd.f32 %v1696_v12, %v3285_v28 }
 0x3ec   :  { %2832 = vmatmul.mubr.msk.f32.vlgmr.msra.gmra.mxu1 %vm511_vm14, %v3420_v4  ;;  %2840 = vmatmul.mubr.msk.f32.vlgmr.msra.gmra.mxu0 %vm511_vm14, %v1828_v40 }
 0x3ed   :  { %v3442_v5 = vadd.f32 %v1695_v58, %v3291_v62  ;;  %2846 = vmatpush3.msk.msra.mxu1 %vm524_vm13, %v2596_v53  ;;  %2842 = vmatprep.mubr.msk.f32.mxu0 %vm511_vm14, %v1829_v47  ;;  %v1936_v6 = vsel %vm121_vm1, %v3276_v48, %v1935_v59  ;;  %v1938_v28 = vsel %vm121_vm1, %v1935_v59, %v1937_v7  ;;  %v1941_v13 = vrot.slane %v3451_v8, 4 }
 0x3ee   :  { %v1947_v11 = vsel %vm1089_vm15, %v1936_v6, 0.0  ;;  %v1948_v14 = vsel %vm1090_vm2, %v1938_v28, 0.0  ;;  %2861 = vmatprep.subr.msk.mxu1 %vm524_vm13, %v2173_v19  ;;  %2854 = vmatpush3.msk.msra.mxu0 %vm524_vm13, %v2602_v36 }
 0x3ef   :  { %2834 = vmatprep.mubr.msk.f32.mxu1 %vm511_vm14, %v3442_v5  ;;  %v1830_v62 = vsel %vm1827_vm7, %v3442_v5, 0.0  ;;  %v1939_v10 = vrot.slane %v3442_v5, 4 }
 0x3f0   :  { %2835 = vmatmul.mubr.msk.f32.gmra.mxu1 %vm511_vm14, %v3451_v8  ;;  %2843 = vmatmul.mubr.msk.f32.gmra.mxu0 %vm511_vm14, %v1830_v62 }
 0x3f1   :  { %2847 = vmatprep.mubr.msk.f32.mxu1 %vm511_vm14, %v1947_v11  ;;  %v1940_v30 = vsel %vm121_vm1, %v1937_v7, %v1939_v10  ;;  %v1942_v17 = vsel %vm121_vm1, %v1939_v10, %v1941_v13 }
 0x3f2   :  { %v1949_v16 = vsel %vm1091_vm3, %v1940_v30, 0.0  ;;  %v1950_v18 = vsel %vm1092_vm6, %v1942_v17, 0.0 }
 0x3f4   :  { %2848 = vmatmul.mubr.msk.f32.vlgmr.msra.gmra.mxu1 %vm511_vm14, %v1948_v14  ;;  %v2619_v14 = vld [vmem:[%s3579_s17] ss:$0 sm:$0xff] }
 0x3f5   :  { %2850 = vmatprep.mubr.msk.f32.mxu1 %vm511_vm14, %v1949_v16  ;;  %2862 = vmatpush3.msk.msra.mxu1 %vm524_vm13, %v2173_v19 }
 0x3f6   :  { %2877 = vmatprep.subr.msk.mxu1 %vm524_vm13, %v2397_v20 }
 0x3f8   :  { %2851 = vmatmul.mubr.msk.f32.gmra.mxu1 %vm511_vm14, %v1950_v18 }
 0x3f9   :  { %2863 = vmatprep.mubr.f32.mxu1 %v2938_v27  ;;  %v2613_v27 = vld [vmem:[%s3576_s14 + $0x4] sm:$0x7] }
 0x3fa   :  { %2869 = vmatprep.subr.msk.mxu0 %vm524_vm13, %v2613_v27 }
 0x4ac   :  { %v2833_v21 = vpop.f32.mrf.mxu1  ;;  %v2841_v52 = vpop.f32.mrf.mxu0 }
 0x4ad   :  { %v1800_v22 = vadd.f32 %v2833_v21, %v2586_v44 }
 0x4ae   :  { %v1794_v53 = vpop.f32.mrf.mxu1  ;;  %v1912_v23 = vpop.f32.mrf.mxu0 }
 0x4af   :  { %v1795_v25 = vadd.f32 %v2586_v44, %v1794_v53  ;;  %v1932_v29 = vadd.f32 %v2841_v52, %v1800_v22 }
 0x4b0   :  { %v2836_v24 = vpop.f32.mrf.mxu1  ;;  %v2844_v32 = vpop.f32.mrf.mxu0 }
 0x4b1   :  { %v1810_v31 = vadd.f32 %v2836_v24, %v2586_v44  ;;  %v1931_v34 = vadd.f32 %v1912_v23, %v1795_v25 }
 0x4b2   :  { %v1804_v26 = vpop.f32.mrf.mxu1  ;;  %v1922_v49 = vpop.f32.mrf.mxu0 }
 0x4b3   :  { %v1805_v35 = vadd.f32 %v2586_v44, %v1804_v26  ;;  %v1934_v46 = vadd.f32 %v2844_v32, %v1810_v31 }
 0x4b4   :  { %v2849_v33 = vpop.f32.mrf.mxu1 }
 0x4b5   :  { %v2054_v39 = vadd.f32 %v2849_v33, %v1932_v29  ;;  %v1933_v54 = vadd.f32 %v1922_v49, %v1805_v35 }
 0x4b6   :  { %v2034_v41 = vpop.f32.mrf.mxu1 }
 0x4b7   :  { %v2053_v42 = vadd.f32 %v2034_v41, %v1931_v34  ;;  %v2058_v55 = vmax.f32 %v2054_v39, 0.0 }
 0x4b8   :  { %v2852_v50 = vpop.f32.mrf.mxu1 }
 0x4b9   :  { %v2057_v56 = vmax.f32 %v2053_v42, 0.0  ;;  %v2056_v57 = vadd.f32 %v2852_v50, %v1934_v46  ;;  %v2171_v9 = vsel %vm1826_vm5, %v2058_v55, 0.0  ;;  %v2277_v12 = vrot.slane %v2058_v55, 4 }
 0x4ba   :  { %v2044_v60 = vpop.f32.mrf.mxu1 }
 0x4bb   :  { %v2170_v63 = vsel %vm1825_vm4, %v2057_v56, 0.0  ;;  %v2275_v0 = vrot.slane %v2057_v56, 4  ;;  %v2055_v37 = vadd.f32 %v2044_v60, %v1933_v54  ;;  %2855 = vmatprep.mubr.msk.f32.mxu0 %vm511_vm14, %v2057_v56  ;;  %v2060_v58 = vmax.f32 %v2056_v57, 0.0 }
 0x4bc   :  { %2856 = vmatmul.mubr.msk.f32.vlgmr.msra.gmra.mxu0 %vm511_vm14, %v2058_v55  ;;  %2864 = vmatmul.mubr.msk.f32.vlgmr.msra.gmra.mxu1 %vm511_vm14, %v2170_v63 }
 0x4bd   :  { %v2059_v45 = vmax.f32 %v2055_v37, 0.0  ;;  %2870 = vmatpush3.msk.msra.mxu0 %vm524_vm13, %v2613_v27  ;;  %2878 = vmatpush3.msk.msra.mxu1 %vm524_vm13, %v2397_v20  ;;  %v2276_v51 = vsel %vm121_vm1, %v3276_v48, %v2275_v0  ;;  %v2278_v47 = vsel %vm121_vm1, %v2275_v0, %v2277_v12  ;;  %v2281_v6 = vrot.slane %v2060_v58, 4 }
 0x4be   :  { %2866 = vmatprep.mubr.msk.f32.mxu1 %vm511_vm14, %v2171_v9  ;;  %v2287_v2 = vsel %vm1089_vm15, %v2276_v51, 0.0  ;;  %v2288_v15 = vsel %vm1090_vm2, %v2278_v47, 0.0 }
 0x4bf   :  { %v2279_v40 = vrot.slane %v2059_v45, 4  ;;  %2858 = vmatprep.mubr.msk.f32.mxu0 %vm511_vm14, %v2059_v45  ;;  %v2172_v59 = vsel %vm1827_vm7, %v2059_v45, 0.0 }
 0x4c0   :  { %2859 = vmatmul.mubr.msk.f32.gmra.mxu0 %vm511_vm14, %v2060_v58  ;;  %2867 = vmatmul.mubr.msk.f32.gmra.mxu1 %vm511_vm14, %v2172_v59 }
 0x4c1   :  { %2871 = vmatprep.mubr.msk.f32.mxu0 %vm511_vm14, %v2287_v2  ;;  %2879 = vmatprep.mubr.msk.f32.mxu1 %vm511_vm14, %v3423_v3  ;;  %v2280_v48 = vsel %vm121_vm1, %v2277_v12, %v2279_v40  ;;  %v2282_v7 = vsel %vm121_vm1, %v2279_v40, %v2281_v6 }
 0x4c2   :  { %v2289_v38 = vsel %vm1091_vm3, %v2280_v48, 0.0  ;;  %v2290_v3 = vsel %vm1092_vm6, %v2282_v7, 0.0 }
 0x4c4   :  { %2872 = vmatmul.mubr.msk.f32.vlgmr.msra.gmra.mxu0 %vm511_vm14, %v2288_v15  ;;  %2880 = vmatmul.mubr.msk.f32.vlgmr.msra.gmra.mxu1 %vm511_vm14, %v3420_v4 }
 0x4c5   :  { %2874 = vmatprep.mubr.msk.f32.mxu0 %vm511_vm14, %v2289_v38  ;;  %2882 = vmatprep.mubr.msk.f32.mxu1 %vm511_vm14, %v3442_v5 }
 0x4c8   :  { %2875 = vmatmul.mubr.msk.f32.gmra.mxu0 %vm511_vm14, %v2290_v3  ;;  %2883 = vmatmul.mubr.msk.f32.gmra.mxu1 %vm511_vm14, %v3451_v8 }
 0x57c   :  { %v2857_v43 = vpop.f32.mrf.mxu0  ;;  %v2865_v4 = vpop.f32.mrf.mxu1 }
 0x57d   :  { %v2157_v11 = vadd.f32 %v2857_v43, %v2603_v61 }
 0x57e   :  { %v2151_v62 = vpop.f32.mrf.mxu0  ;;  %v2252_v10 = vpop.f32.mrf.mxu1 }
 0x57f   :  { %v2152_v5 = vadd.f32 %v2603_v61, %v2151_v62  ;;  %v2272_v16 = vadd.f32 %v2865_v4, %v2157_v11 }
 0x580   :  { %v2860_v28 = vpop.f32.mrf.mxu0  ;;  %v2868_v30 = vpop.f32.mrf.mxu1 }
 0x581   :  { %v2167_v8 = vadd.f32 %v2860_v28, %v2603_v61  ;;  %v2271_v36 = vadd.f32 %v2252_v10, %v2152_v5 }
 0x582   :  { %v2161_v13 = vpop.f32.mrf.mxu0  ;;  %v2262_v1 = vpop.f32.mrf.mxu1 }
 0x583   :  { %v2162_v19 = vadd.f32 %v2603_v61, %v2161_v13  ;;  %v2274_v52 = vadd.f32 %v2868_v30, %v2167_v8 }
 0x584   :  { %v2873_v17 = vpop.f32.mrf.mxu0  ;;  %v2881_v18 = vpop.f32.mrf.mxu1 }
 0x585   :  { %v2394_v27 = vadd.f32 %v2873_v17, %v2272_v16  ;;  %v2480_v20 = vadd.f32 %v2881_v18, %v2619_v14  ;;  %v2273_v26 = vadd.f32 %v2262_v1, %v2162_v19 }
 0x586   :  { %v2374_v21 = vpop.f32.mrf.mxu0  ;;  %v2474_v44 = vpop.f32.mrf.mxu1 }
 0x587   :  { %v2494_v53 = vadd.f32 %v2480_v20, %v2394_v27  ;;  %v2393_v22 = vadd.f32 %v2374_v21, %v2271_v36  ;;  %v2475_v23 = vadd.f32 %v2619_v14, %v2474_v44 }
 0x588   :  { %v2876_v24 = vpop.f32.mrf.mxu0  ;;  %v2884_v25 = vpop.f32.mrf.mxu1 }
 0x589   :  { %2498 = vst.msk [vmem:[%s3580_s18 + $0x8] sm:$0xff] %vm108_vm0, %v2494_v53  ;;  %v2493_v29 = vadd.f32 %v2475_v23, %v2393_v22  ;;  %v2396_v31 = vadd.f32 %v2876_v24, %v2274_v52  ;;  %v2490_v32 = vadd.f32 %v2884_v25, %v2619_v14 }
 0x58a   :  { %v2384_v33 = vpop.f32.mrf.mxu0  ;;  %v2484_v34 = vpop.f32.mrf.mxu1 }
 0x58b   :  { %2497 = vst.msk [vmem:[%s3580_s18] sm:$0xff] %vm108_vm0, %v2493_v29  ;;  %v2496_v35 = vadd.f32 %v2490_v32, %v2396_v31  ;;  %v2395_v39 = vadd.f32 %v2384_v33, %v2273_v26  ;;  %v2485_v41 = vadd.f32 %v2619_v14, %v2484_v34 }
 0x58d   :  { %2500 = vst.msk [vmem:[%s3580_s18 + $0x18] sm:$0xff] %vm108_vm0, %v2496_v35  ;;  %v2495_v42 = vadd.f32 %v2485_v41, %v2395_v39 }
 0x58f   :  { %2499 = vst.msk [vmem:[%s3580_s18 + $0x10] sm:$0xff] %vm108_vm0, %v2495_v42 }
 0x590   :  { %2505 = vsyncpa [#allocation3], 1 }
 0x591   :  { %2506 = vsyncpa [#allocation5], 1 }

</bundles_post_ra>
